<compile_context>
chip_gen: v7x
topology: tpu7x:2x2x1
jax: 0.10.0
libtpu: 0.0.40
codegen_flags: <defaults>
</compile_context>

<pallas_src>
import math
import functools

import jax
import jax.numpy as jnp
from jax.experimental import pallas as pl
from jax.experimental.pallas import tpu as pltpu


def _round_up(x, m):
    return ((x + m - 1) // m) * m


def _layernorm(x, gamma, beta, d_model, eps=1e-5):
    """LayerNorm over the first `d_model` lanes of a lane-padded f32 tensor.

    When the tensor is already lane-dense (d_model == padded width) the lane
    masking is skipped at compile time."""
    d_pad = x.shape[-1]
    inv_d = 1.0 / float(d_model)
    if d_pad == d_model:
        mu = jnp.sum(x, axis=-1, keepdims=True) * inv_d
        diff = x - mu
    else:
        lane = jax.lax.broadcasted_iota(jnp.int32, (1, d_pad), 1)
        mask = (lane < d_model).astype(jnp.float32)
        xm = x * mask
        mu = jnp.sum(xm, axis=-1, keepdims=True) * inv_d
        diff = (x - mu) * mask
    var = jnp.sum(diff * diff, axis=-1, keepdims=True) * inv_d
    return diff * jax.lax.rsqrt(var + eps) * gamma + beta


# ---------------------------------------------------------------------------
# fused kernel
# ---------------------------------------------------------------------------
def mmt_fused_kernel(hid0_ref, locin_ref, objmask_ref, keybias_ref,
                     wloc_ref, bloc_ref, gloc_ref, betaloc_ref,
                     ln1g_ref, ln1b_ref, wqkv_ref, bqkv_ref, wo_ref, bo_ref,
                     ln2g_ref, ln2b_ref, w1_ref, b1_ref, w2_ref, b2_ref,
                     out_ref,
                     x_sc, x2_sc, ff_sc, ctx_sc,
                     *, nhead, d_model, seq_len, batch_per_block,
                     add_loc_every_layer):
    rblk = pl.program_id(0)          # row block (parallel across TCs on v7x)
    l = pl.program_id(1)             # encoder layer (sequential)
    c = pl.program_id(2)             # FFN weight chunk (sequential)
    nc = pl.num_programs(2)

    n_rows, d_pad = out_ref.shape
    bf16 = jnp.bfloat16
    dh = d_model // nhead
    scale = 1.0 / math.sqrt(dh)

    # ------------- attention / pre-FFN phase: once per (row block, layer) ----
    @pl.when(c == 0)
    def _attn_phase():
        # hidden states are resident in out_ref across the layer axis
        @pl.when(l == 0)
        def _init():
            out_ref[...] = hid0_ref[...]

        x = out_ref[...]                                       # [R, Dp] f32

        # loc layer: Linear(dim_loc->D) + LayerNorm(D) added to object rows
        def _loc_update():
            loc_lin = jnp.dot(locin_ref[...], wloc_ref[0],
                              preferred_element_type=jnp.float32) + bloc_ref[0]
            loc_emb = _layernorm(loc_lin, gloc_ref[0], betaloc_ref[0], d_model)
            out_ref[...] = x + loc_emb * objmask_ref[:, 0:1]

        if add_loc_every_layer:          # 'same_all' / 'diff_all'
            _loc_update()
        else:                            # 'same_0': only before layer 0
            pl.when(l == 0)(_loc_update)
        x = out_ref[...]

        # ---- self-attention (pre-norm); one fused full-width QKV matmul ----
        x2 = _layernorm(x, ln1g_ref[0], ln1b_ref[0], d_model).astype(bf16)
        qkv = jnp.dot(x2, wqkv_ref[0],
                      preferred_element_type=jnp.float32) + bqkv_ref[0]
        q = (qkv[:, :d_pad] * scale).astype(bf16)
        k = qkv[:, d_pad:2 * d_pad].astype(bf16)
        v = qkv[:, 2 * d_pad:].astype(bf16)

        # batch-outer / head-inner; per-head contexts go straight into the
        # ctx VMEM scratch slab (bounded live set, no list-of-B accumulators).
        for b in range(batch_per_block):
            r0 = b * seq_len
            kb = keybias_ref[pl.ds(rblk * batch_per_block + b, 1), :seq_len]
            pieces = []
            for h in range(nhead):
                hs, he = h * dh, (h + 1) * dh
                s = jax.lax.dot_general(
                    q[r0:r0 + seq_len, hs:he], k[r0:r0 + seq_len, hs:he],
                    (((1,), (1,)), ((), ())),
                    preferred_element_type=jnp.float32)        # [L, L]
                s = s + kb                                     # finite -1e30 bias
                m = jnp.max(s, axis=-1, keepdims=True)
                e = jnp.exp(s - m)
                p = (e / jnp.sum(e, axis=-1, keepdims=True)).astype(bf16)
                pieces.append(jnp.dot(p, v[r0:r0 + seq_len, hs:he],
                                      preferred_element_type=jnp.float32))
            if d_pad > d_model:
                pieces.append(jnp.zeros((seq_len, d_pad - d_model), jnp.float32))
            ctx_sc[r0:r0 + seq_len, :] = jnp.concatenate(pieces, -1).astype(bf16)

        # single full-width output projection over all rows of the block
        attn = jnp.dot(ctx_sc[...], wo_ref[0],
                       preferred_element_type=jnp.float32) + bo_ref[0]
        x = x + attn                                           # dropout1 = id

        x_sc[...] = x
        x2_sc[...] = _layernorm(x, ln2g_ref[0], ln2b_ref[0], d_model).astype(bf16)
        ff_sc[...] = jnp.zeros_like(ff_sc)

    # ------------- FFN: w1/w2 streamed over the chunk grid axis --------------
    h1 = jnp.dot(x2_sc[...], w1_ref[0],
                 preferred_element_type=jnp.float32) + b1_ref[0]
    h1 = jax.nn.gelu(h1, approximate=True)         # tanh gelu (EUP); dropout=id
    ff_sc[...] += jnp.dot(h1.astype(jnp.bfloat16), w2_ref[0],
                          preferred_element_type=jnp.float32)

    @pl.when(c == nc - 1)
    def _finish():
        out_ref[...] = x_sc[...] + ff_sc[...] + b2_ref[0]      # dropout2 = id


# ---------------------------------------------------------------------------
# wrapper
# ---------------------------------------------------------------------------
def _vmem_limit_bytes():
    # Explicit scoped-VMEM budget: generation-aware with headroom, safe for
    # v7x's 64 MiB physical VMEM and raising the 16/32 MiB defaults elsewhere.
    try:
        cap = pltpu.get_tpu_info().vmem_capacity_bytes
    except Exception:
        cap = 64 << 20
    return int(max(32 << 20, min(cap - (8 << 20), 100 << 20)))


def mmt_forward(txt_embeds, txt_masks, obj_embeds, obj_locs, obj_masks,
                params, cfg):
    f32, bf16 = jnp.float32, jnp.bfloat16
    B, Lt, D = txt_embeds.shape
    Lo = obj_embeds.shape[1]
    dim_loc = obj_locs.shape[2]
    L = Lt + Lo
    N = B * L
    nhead = cfg['num_attention_heads']
    nl = cfg['num_hidden_layers']
    enc = cfg['obj_loc_encoding']
    Fd = params['layers'][0]['w1'].shape[1]

    Dp = _round_up(D, 128)
    DLp = _round_up(dim_loc, 128)
    KBp = _round_up(L, 128)

    # FFN streamed in 128-multiple chunks of the feed-forward dim.
    fd_chunk = Fd
    for cand in (512, 256, 128):
        if Fd % cand == 0:
            fd_chunk = cand
            break
    n_fd_chunks = Fd // fd_chunk

    # Row-block parallel axis (2 blocks, one per v7x TensorCore) only when the
    # blocks stay sequence- and sublane-aligned; otherwise a single block.
    n_row_blocks = 2 if (B % 2 == 0 and ((B // 2) * L) % 8 == 0) else 1
    batch_per_block = B // n_row_blocks
    rows_per_block = N // n_row_blocks

    # ---- activations: lane-padded, batch-flattened ----
    hidden = jnp.concatenate([txt_embeds, obj_embeds], axis=1).astype(f32)
    hidden0 = jnp.pad(hidden.reshape(N, D), ((0, 0), (0, Dp - D)))

    loc_pad = jnp.pad(obj_locs.astype(bf16), ((0, 0), (0, 0), (0, DLp - dim_loc)))
    loc_in = jnp.concatenate(
        [jnp.zeros((B, Lt, DLp), bf16), loc_pad], axis=1).reshape(N, DLp)

    # narrow obj-row mask (only lane 0 is read in-kernel)
    obj_mask = jnp.concatenate(
        [jnp.zeros((B, Lt), f32), jnp.ones((B, Lo), f32)], axis=1).reshape(N, 1)
    obj_mask = jnp.broadcast_to(obj_mask, (N, 128))

    masks = jnp.concatenate([txt_masks, obj_masks], axis=1)          # [B, L]
    key_bias = jnp.where(masks, 0.0, -1e30).astype(f32)
    key_bias = jnp.pad(key_bias, ((0, 0), (0, KBp - L)))             # [B, KBp]

    # ---- weights: bf16 matmul operands, f32 bias/LN params, layer-stacked ----
    def padw(a, r, c, dt):
        a = jnp.asarray(a, f32)
        return jnp.pad(a, ((0, r - a.shape[0]), (0, c - a.shape[1]))).astype(dt)

    def stack(fn):
        return jnp.stack([fn(lp) for lp in params['layers']])

    wqkv = stack(lambda lp: jnp.concatenate(
        [padw(lp['wq'], Dp, Dp, bf16), padw(lp['wk'], Dp, Dp, bf16),
         padw(lp['wv'], Dp, Dp, bf16)], axis=1))
    bqkv = stack(lambda lp: jnp.concatenate(
        [padw(lp['bq'], 1, Dp, f32), padw(lp['bk'], 1, Dp, f32),
         padw(lp['bv'], 1, Dp, f32)], axis=1))
    ln1g = stack(lambda lp: padw(lp['ln1g'], 1, Dp, f32))
    ln1b = stack(lambda lp: padw(lp['ln1b'], 1, Dp, f32))
    wo = stack(lambda lp: padw(lp['wo'], Dp, Dp, bf16))
    bo = stack(lambda lp: padw(lp['bo'], 1, Dp, f32))
    ln2g = stack(lambda lp: padw(lp['ln2g'], 1, Dp, f32))
    ln2b = stack(lambda lp: padw(lp['ln2b'], 1, Dp, f32))
    w1 = stack(lambda lp: padw(lp['w1'], Dp, Fd, bf16))
    b1 = stack(lambda lp: padw(lp['b1'], 1, Fd, f32))
    w2 = stack(lambda lp: padw(lp['w2'], Fd, Dp, bf16))
    b2 = stack(lambda lp: padw(lp['b2'], 1, Dp, f32))

    wloc = jnp.stack([padw(lp['w'], DLp, Dp, bf16) for lp in params['loc']])
    bloc = jnp.stack([padw(lp['b'], 1, Dp, f32) for lp in params['loc']])
    gloc = jnp.stack([padw(lp['g'], 1, Dp, f32) for lp in params['loc']])
    betaloc = jnp.stack([padw(lp['beta'], 1, Dp, f32) for lp in params['loc']])

    # ---- block specs ----
    def rowblk(lanes):
        return pl.BlockSpec((rows_per_block, lanes), lambda r, l, c: (r, 0))

    def layer3(shape, idx=None):
        return pl.BlockSpec(
            (1,) + shape, idx if idx is not None else (lambda r, l, c: (l, 0, 0)))

    loc_idx = ((lambda r, l, c: (l, 0, 0)) if enc == 'diff_all'
               else (lambda r, l, c: (0, 0, 0)))

    in_specs = [
        rowblk(Dp),                                   # hidden0
        rowblk(DLp),                                  # loc features (seq frame)
        rowblk(128),                                  # narrow obj-row mask
        # key-padding bias: tiny, constant index -> fully resident.
        # NOTE: pipeline_mode=pl.Buffered(1) would drop its 2nd (unused) buffer.
        pl.BlockSpec((B, KBp), lambda r, l, c: (0, 0)),
        layer3((DLp, Dp), loc_idx), layer3((1, Dp), loc_idx),
        layer3((1, Dp), loc_idx), layer3((1, Dp), loc_idx),
        layer3((1, Dp)), layer3((1, Dp)),             # ln1 gamma / beta
        layer3((Dp, 3 * Dp)), layer3((1, 3 * Dp)),    # fused QKV weight / bias
        layer3((Dp, Dp)), layer3((1, Dp)),            # out proj
        layer3((1, Dp)), layer3((1, Dp)),             # ln2 gamma / beta
        layer3((Dp, fd_chunk), lambda r, l, c: (l, 0, c)),   # w1 chunk
        layer3((1, fd_chunk), lambda r, l, c: (l, 0, c)),    # b1 chunk
        layer3((fd_chunk, Dp), lambda r, l, c: (l, c, 0)),   # w2 chunk
        layer3((1, Dp)),                                     # b2
    ]
    out_spec = pl.BlockSpec((rows_per_block, Dp), lambda r, l, c: (r, 0))

    scratch_shapes = [
        pltpu.VMEM((rows_per_block, Dp), f32),    # x  (post-attention residual)
        pltpu.VMEM((rows_per_block, Dp), bf16),   # LN2(x), FFN matmul input
        pltpu.VMEM((rows_per_block, Dp), f32),    # FFN accumulator
        pltpu.VMEM((rows_per_block, Dp), bf16),   # per-head attention contexts
    ]

    kernel = functools.partial(
        mmt_fused_kernel, nhead=nhead, d_model=D, seq_len=L,
        batch_per_block=batch_per_block,
        add_loc_every_layer=(enc in ('same_all', 'diff_all')))

    out = pl.pallas_call(
        kernel,
        out_shape=jax.ShapeDtypeStruct((N, Dp), f32),
        grid=(n_row_blocks, nl, n_fd_chunks),
        in_specs=in_specs,
        out_specs=out_spec,
        scratch_shapes=scratch_shapes,
        compiler_params=pltpu.CompilerParams(
            dimension_semantics=("parallel", "arbitrary", "arbitrary"),
            vmem_limit_bytes=_vmem_limit_bytes()),
    )(hidden0, loc_in, obj_mask, key_bias,
      wloc, bloc, gloc, betaloc,
      ln1g, ln1b, wqkv, bqkv, wo, bo, ln2g, ln2b,
      w1, b1, w2, b2)

    hidden_out = out[:, :D].reshape(B, L, D)
    return {'txt_embeds': hidden_out[:, :Lt], 'obj_embeds': hidden_out[:, Lt:]}


# ---------------------------------------------------------------------------
# deterministic parameter init (shapes follow the PyTorch module __init__)
# ---------------------------------------------------------------------------
def init_params(key, cfg):
    D = cfg['hidden_size']
    Fd = cfg['dim_feedforward']
    dl = cfg['dim_loc']
    n_layers = cfg['num_hidden_layers']

    def normal(k, shape):
        return 0.02 * jax.random.normal(k, shape, jnp.float32)

    keys = iter(jax.random.split(key, 5 * n_layers + 8))
    zD = jnp.zeros((1, D), jnp.float32)
    zF = jnp.zeros((1, Fd), jnp.float32)
    oD = jnp.ones((1, D), jnp.float32)

    layers = []
    for _ in range(n_layers):
        in_proj = normal(next(keys), (3 * D, D))          # MHA in_proj_weight
        wq, wk, wv = in_proj[:D].T, in_proj[D:2 * D].T, in_proj[2 * D:].T
        wo = normal(next(keys), (D, D)).T                 # MHA out_proj
        w1 = normal(next(keys), (Fd, D)).T                # linear1 (x @ W)
        w2 = normal(next(keys), (D, Fd)).T                # linear2 (x @ W)
        layers.append(dict(ln1g=oD, ln1b=zD,
                           wq=wq, bq=zD, wk=wk, bk=zD, wv=wv, bv=zD,
                           wo=wo, bo=zD,
                           ln2g=oD, ln2b=zD,
                           w1=w1, b1=zF, w2=w2, b2=zD))

    n_loc = 1 if cfg['obj_loc_encoding'] in ('same_0', 'same_all') else n_layers
    loc = []
    for _ in range(n_loc):
        w = normal(next(keys), (D, dl)).T                 # loc Linear (x @ W)
        loc.append(dict(w=w, b=zD, g=oD, beta=zD))        # + LayerNorm

    return dict(layers=layers, loc=loc)


# ---------------------------------------------------------------------------
if __name__ == "__main__":
    cfg = dict(hidden_size=32,
               num_attention_heads=4,
               num_hidden_layers=2,
               dim_loc=6,
               dim_feedforward=2048,   # hardcoded in MMT.__init__
               obj_loc_encoding='same_all')

    B, Lt, Lo = 2, 4, 4
    key = jax.random.PRNGKey(0)
    k0, k1, k2, k3 = jax.random.split(key, 4)

    txt_embeds = jax.random.normal(k0, (B, Lt, cfg['hidden_size']), jnp.float32)
    obj_embeds = jax.random.normal(k1, (B, Lo, cfg['hidden_size']), jnp.float32)
    obj_locs = jax.random.normal(k2, (B, Lo, cfg['dim_loc']), jnp.float32)
    txt_masks = jnp.array([[1, 1, 1, 1], [1, 1, 1, 0]], dtype=bool)
    obj_masks = jnp.array([[1, 1, 1, 1], [1, 1, 0, 0]], dtype=bool)

    params = init_params(k3, cfg)

    outs = mmt_forward(txt_embeds, txt_masks, obj_embeds, obj_locs, obj_masks,
                       params, cfg)
    jax.block_until_ready(outs)

    assert outs['txt_embeds'].shape == (B, Lt, cfg['hidden_size'])
    assert outs['obj_embeds'].shape == (B, Lo, cfg['hidden_size'])
    assert bool(jnp.all(jnp.isfinite(outs['txt_embeds'])))
    assert bool(jnp.all(jnp.isfinite(outs['obj_embeds'])))
    print("KERNEL_OK")
</pallas_src>

<mosaic_0001>
module attributes {stable_mosaic.version = 11 : i64} {
  func.func @mmt_fused_kernel(%arg0: i32, %arg1: i32, %arg2: i32, %arg3: memref<8x128xf32, #tpu.memory_space<vmem>>, %arg4: memref<8x128xbf16, #tpu.memory_space<vmem>>, %arg5: memref<8x128xf32, #tpu.memory_space<vmem>>, %arg6: memref<2x128xf32, #tpu.memory_space<vmem>>, %arg7: memref<1x128x128xbf16, #tpu.memory_space<vmem>>, %arg8: memref<1x1x128xf32, #tpu.memory_space<vmem>>, %arg9: memref<1x1x128xf32, #tpu.memory_space<vmem>>, %arg10: memref<1x1x128xf32, #tpu.memory_space<vmem>>, %arg11: memref<1x1x128xf32, #tpu.memory_space<vmem>>, %arg12: memref<1x1x128xf32, #tpu.memory_space<vmem>>, %arg13: memref<1x128x384xbf16, #tpu.memory_space<vmem>>, %arg14: memref<1x1x384xf32, #tpu.memory_space<vmem>>, %arg15: memref<1x128x128xbf16, #tpu.memory_space<vmem>>, %arg16: memref<1x1x128xf32, #tpu.memory_space<vmem>>, %arg17: memref<1x1x128xf32, #tpu.memory_space<vmem>>, %arg18: memref<1x1x128xf32, #tpu.memory_space<vmem>>, %arg19: memref<1x128x512xbf16, #tpu.memory_space<vmem>>, %arg20: memref<1x1x512xf32, #tpu.memory_space<vmem>>, %arg21: memref<1x512x128xbf16, #tpu.memory_space<vmem>>, %arg22: memref<1x1x128xf32, #tpu.memory_space<vmem>>, %arg23: memref<8x128xf32, #tpu.memory_space<vmem>>, %arg24: memref<8x128xf32, #tpu.memory_space<vmem>>, %arg25: memref<8x128xbf16, #tpu.memory_space<vmem>>, %arg26: memref<8x128xf32, #tpu.memory_space<vmem>>, %arg27: memref<8x128xbf16, #tpu.memory_space<vmem>>) attributes {dimension_semantics = [#tpu.dimension_semantics<parallel>, #tpu.dimension_semantics<arbitrary>, #tpu.dimension_semantics<arbitrary>], iteration_bounds = array<i64: 2, 2, 4>, scalar_prefetch = 0 : i64, scratch_operands = 4 : i64, tpu.core_type = #tpu.core_type<tc>, window_params = [{transform_indices = @transform_0, window_bounds = array<i64: 8, 128>}, {transform_indices = @transform_1, window_bounds = array<i64: 8, 128>}, {transform_indices = @transform_2, window_bounds = array<i64: 8, 128>}, {pipeline_mode = #tpu.pipeline_mode<synchronous>, transform_indices = @transform_3, window_bounds = array<i64: 2, 128>}, {pipeline_mode = #tpu.pipeline_mode<synchronous>, transform_indices = @transform_4, window_bounds = array<i64: 1, 128, 128>}, {pipeline_mode = #tpu.pipeline_mode<synchronous>, transform_indices = @transform_5, window_bounds = array<i64: 1, 1, 128>}, {pipeline_mode = #tpu.pipeline_mode<synchronous>, transform_indices = @transform_6, window_bounds = array<i64: 1, 1, 128>}, {pipeline_mode = #tpu.pipeline_mode<synchronous>, transform_indices = @transform_7, window_bounds = array<i64: 1, 1, 128>}, {transform_indices = @transform_8, window_bounds = array<i64: 1, 1, 128>}, {transform_indices = @transform_9, window_bounds = array<i64: 1, 1, 128>}, {transform_indices = @transform_10, window_bounds = array<i64: 1, 128, 384>}, {transform_indices = @transform_11, window_bounds = array<i64: 1, 1, 384>}, {transform_indices = @transform_12, window_bounds = array<i64: 1, 128, 128>}, {transform_indices = @transform_13, window_bounds = array<i64: 1, 1, 128>}, {transform_indices = @transform_14, window_bounds = array<i64: 1, 1, 128>}, {transform_indices = @transform_15, window_bounds = array<i64: 1, 1, 128>}, {transform_indices = @transform_16, window_bounds = array<i64: 1, 128, 512>}, {transform_indices = @transform_17, window_bounds = array<i64: 1, 1, 512>}, {transform_indices = @transform_18, window_bounds = array<i64: 1, 512, 128>}, {transform_indices = @transform_19, window_bounds = array<i64: 1, 1, 128>}, {transform_indices = @transform_20, window_bounds = array<i64: 8, 128>}]} {
    %c0_i32 = arith.constant 0 : i32
    %0 = arith.cmpi eq, %arg2, %c0_i32 : i32
    %1 = arith.extui %0 : i1 to i32
    %c0_i32_0 = arith.constant 0 : i32
    %2 = arith.cmpi ne, %1, %c0_i32_0 : i32
    scf.if %2 {
      %c0_i32_21 = arith.constant 0 : i32
      %34 = arith.cmpi eq, %arg1, %c0_i32_21 : i32
      %35 = arith.extui %34 : i1 to i32
      %c0_i32_22 = arith.constant 0 : i32
      %36 = arith.cmpi ne, %35, %c0_i32_22 : i32
      scf.if %36 {
        %c0_120 = arith.constant 0 : index
        %c0_121 = arith.constant 0 : index
        %257 = vector.load %arg3[%c0_120, %c0_121] : memref<8x128xf32, #tpu.memory_space<vmem>>, vector<8x128xf32>
        %c0_122 = arith.constant 0 : index
        %c0_123 = arith.constant 0 : index
        %258 = vector.load %arg23[%c0_122, %c0_123] : memref<8x128xf32, #tpu.memory_space<vmem>>, vector<8x128xf32>
        tpu.vector_store %arg23[%c0_122, %c0_123], %257 {strides = array<i32>} : memref<8x128xf32, #tpu.memory_space<vmem>>, vector<8x128xf32>,
      } else {
      }
      %c0_23 = arith.constant 0 : index
      %c0_24 = arith.constant 0 : index
      %37 = vector.load %arg23[%c0_23, %c0_24] : memref<8x128xf32, #tpu.memory_space<vmem>>, vector<8x128xf32>
      %c0_25 = arith.constant 0 : index
      %c0_26 = arith.constant 0 : index
      %38 = vector.load %arg4[%c0_25, %c0_26] : memref<8x128xbf16, #tpu.memory_space<vmem>>, vector<8x128xbf16>
      %c0_27 = arith.constant 0 : index
      %c0_28 = arith.constant 0 : index
      %c0_29 = arith.constant 0 : index
      %39 = vector.load %arg7[%c0_27, %c0_28, %c0_29] : memref<1x128x128xbf16, #tpu.memory_space<vmem>>, vector<1x128x128xbf16>
      %40 = vector.shape_cast %39 : vector<1x128x128xbf16> to vector<128x128xbf16>
      %cst_30 = arith.constant dense<0.000000e+00> : vector<8x128xf32>
      %41 = tpu.matmul %38, %40, %cst_30 {dimension_numbers = #tpu.dot_dimension_numbers<[1], [0], [0], [1], [0, 0, 1, 1], [], []>} : vector<8x128xbf16>, vector<128x128xbf16>, vector<8x128xf32> -> vector<8x128xf32>
      %c0_31 = arith.constant 0 : index
      %c0_32 = arith.constant 0 : index
      %c0_33 = arith.constant 0 : index
      %42 = vector.load %arg8[%c0_31, %c0_32, %c0_33] : memref<1x1x128xf32, #tpu.memory_space<vmem>>, vector<1x1x128xf32>
      %43 = vector.shape_cast %42 : vector<1x1x128xf32> to vector<1x128xf32>
      %44 = vector.broadcast %43 : vector<1x128xf32> to vector<8x128xf32>
      %45 = arith.addf %41, %44 : vector<8x128xf32>
      %c0_34 = arith.constant 0 : index
      %c0_35 = arith.constant 0 : index
      %c0_36 = arith.constant 0 : index
      %46 = vector.load %arg9[%c0_34, %c0_35, %c0_36] : memref<1x1x128xf32, #tpu.memory_space<vmem>>, vector<1x1x128xf32>
      %47 = vector.shape_cast %46 : vector<1x1x128xf32> to vector<1x128xf32>
      %c0_37 = arith.constant 0 : index
      %c0_38 = arith.constant 0 : index
      %c0_39 = arith.constant 0 : index
      %48 = vector.load %arg10[%c0_37, %c0_38, %c0_39] : memref<1x1x128xf32, #tpu.memory_space<vmem>>, vector<1x1x128xf32>
      %49 = vector.shape_cast %48 : vector<1x1x128xf32> to vector<1x128xf32>
      %50 = tpu.iota {dimensions = array<i32: 1>} : vector<1x128xi32>
      %c32_i32 = arith.constant 32 : i32
      %51 = vector.broadcast %c32_i32 : i32 to vector<1x128xi32>
      %52 = arith.cmpi slt, %50, %51 : vector<1x128xi32>
      %53 = arith.extui %52 : vector<1x128xi1> to vector<1x128xi32>
      %54 = arith.sitofp %53 : vector<1x128xi32> to vector<1x128xf32>
      %55 = vector.broadcast %54 : vector<1x128xf32> to vector<8x128xf32>
      %56 = arith.mulf %45, %55 : vector<8x128xf32>
      %cst_40 = arith.constant dense<0.000000e+00> : vector<8xf32>
      %57 = vector.multi_reduction <add>, %56, %cst_40 [1] : vector<8x128xf32> to vector<8xf32>
      %58 = vector.shape_cast %57 : vector<8xf32> to vector<8x1xf32>
      %cst_41 = arith.constant 3.125000e-02 : f32
      %59 = vector.broadcast %cst_41 : f32 to vector<8x1xf32>
      %60 = arith.mulf %58, %59 : vector<8x1xf32>
      %61 = vector.broadcast %60 : vector<8x1xf32> to vector<8x128xf32>
      %62 = arith.subf %45, %61 : vector<8x128xf32>
      %63 = vector.broadcast %54 : vector<1x128xf32> to vector<8x128xf32>
      %64 = arith.mulf %62, %63 : vector<8x128xf32>
      %65 = arith.mulf %64, %64 : vector<8x128xf32>
      %cst_42 = arith.constant dense<0.000000e+00> : vector<8xf32>
      %66 = vector.multi_reduction <add>, %65, %cst_42 [1] : vector<8x128xf32> to vector<8xf32>
      %67 = vector.shape_cast %66 : vector<8xf32> to vector<8x1xf32>
      %cst_43 = arith.constant 3.125000e-02 : f32
      %68 = vector.broadcast %cst_43 : f32 to vector<8x1xf32>
      %69 = arith.mulf %67, %68 : vector<8x1xf32>
      %cst_44 = arith.constant 9.99999974E-6 : f32
      %70 = vector.broadcast %cst_44 : f32 to vector<8x1xf32>
      %71 = arith.addf %69, %70 : vector<8x1xf32>
      %72 = math.rsqrt %71 : vector<8x1xf32>
      %73 = vector.broadcast %72 : vector<8x1xf32> to vector<8x128xf32>
      %74 = arith.mulf %64, %73 : vector<8x128xf32>
      %75 = vector.broadcast %47 : vector<1x128xf32> to vector<8x128xf32>
      %76 = arith.mulf %74, %75 : vector<8x128xf32>
      %77 = vector.broadcast %49 : vector<1x128xf32> to vector<8x128xf32>
      %78 = arith.addf %76, %77 : vector<8x128xf32>
      %c0_45 = arith.constant 0 : index
      %c0_46 = arith.constant 0 : index
      %79 = vector.load %arg5[%c0_45, %c0_46] : memref<8x128xf32, #tpu.memory_space<vmem>>, vector<8x1xf32>
      %80 = vector.broadcast %79 : vector<8x1xf32> to vector<8x128xf32>
      %81 = arith.mulf %78, %80 : vector<8x128xf32>
      %82 = arith.addf %37, %81 : vector<8x128xf32>
      %c0_47 = arith.constant 0 : index
      %c0_48 = arith.constant 0 : index
      %83 = vector.load %arg23[%c0_47, %c0_48] : memref<8x128xf32, #tpu.memory_space<vmem>>, vector<8x128xf32>
      tpu.vector_store %arg23[%c0_47, %c0_48], %82 {strides = array<i32>} : memref<8x128xf32, #tpu.memory_space<vmem>>, vector<8x128xf32>,
      %c0_49 = arith.constant 0 : index
      %c0_50 = arith.constant 0 : index
      %84 = vector.load %arg23[%c0_49, %c0_50] : memref<8x128xf32, #tpu.memory_space<vmem>>, vector<8x128xf32>
      %c0_51 = arith.constant 0 : index
      %c0_52 = arith.constant 0 : index
      %c0_53 = arith.constant 0 : index
      %85 = vector.load %arg11[%c0_51, %c0_52, %c0_53] : memref<1x1x128xf32, #tpu.memory_space<vmem>>, vector<1x1x128xf32>
      %86 = vector.shape_cast %85 : vector<1x1x128xf32> to vector<1x128xf32>
      %c0_54 = arith.constant 0 : index
      %c0_55 = arith.constant 0 : index
      %c0_56 = arith.constant 0 : index
      %87 = vector.load %arg12[%c0_54, %c0_55, %c0_56] : memref<1x1x128xf32, #tpu.memory_space<vmem>>, vector<1x1x128xf32>
      %88 = vector.shape_cast %87 : vector<1x1x128xf32> to vector<1x128xf32>
      %89 = tpu.iota {dimensions = array<i32: 1>} : vector<1x128xi32>
      %c32_i32_57 = arith.constant 32 : i32
      %90 = vector.broadcast %c32_i32_57 : i32 to vector<1x128xi32>
      %91 = arith.cmpi slt, %89, %90 : vector<1x128xi32>
      %92 = arith.extui %91 : vector<1x128xi1> to vector<1x128xi32>
      %93 = arith.sitofp %92 : vector<1x128xi32> to vector<1x128xf32>
      %94 = vector.broadcast %93 : vector<1x128xf32> to vector<8x128xf32>
      %95 = arith.mulf %84, %94 : vector<8x128xf32>
      %cst_58 = arith.constant dense<0.000000e+00> : vector<8xf32>
      %96 = vector.multi_reduction <add>, %95, %cst_58 [1] : vector<8x128xf32> to vector<8xf32>
      %97 = vector.shape_cast %96 : vector<8xf32> to vector<8x1xf32>
      %cst_59 = arith.constant 3.125000e-02 : f32
      %98 = vector.broadcast %cst_59 : f32 to vector<8x1xf32>
      %99 = arith.mulf %97, %98 : vector<8x1xf32>
      %100 = vector.broadcast %99 : vector<8x1xf32> to vector<8x128xf32>
      %101 = arith.subf %84, %100 : vector<8x128xf32>
      %102 = vector.broadcast %93 : vector<1x128xf32> to vector<8x128xf32>
      %103 = arith.mulf %101, %102 : vector<8x128xf32>
      %104 = arith.mulf %103, %103 : vector<8x128xf32>
      %cst_60 = arith.constant dense<0.000000e+00> : vector<8xf32>
      %105 = vector.multi_reduction <add>, %104, %cst_60 [1] : vector<8x128xf32> to vector<8xf32>
      %106 = vector.shape_cast %105 : vector<8xf32> to vector<8x1xf32>
      %cst_61 = arith.constant 3.125000e-02 : f32
      %107 = vector.broadcast %cst_61 : f32 to vector<8x1xf32>
      %108 = arith.mulf %106, %107 : vector<8x1xf32>
      %cst_62 = arith.constant 9.99999974E-6 : f32
      %109 = vector.broadcast %cst_62 : f32 to vector<8x1xf32>
      %110 = arith.addf %108, %109 : vector<8x1xf32>
      %111 = math.rsqrt %110 : vector<8x1xf32>
      %112 = vector.broadcast %111 : vector<8x1xf32> to vector<8x128xf32>
      %113 = arith.mulf %103, %112 : vector<8x128xf32>
      %114 = vector.broadcast %86 : vector<1x128xf32> to vector<8x128xf32>
      %115 = arith.mulf %113, %114 : vector<8x128xf32>
      %116 = vector.broadcast %88 : vector<1x128xf32> to vector<8x128xf32>
      %117 = arith.addf %115, %116 : vector<8x128xf32>
      %118 = arith.truncf %117 : vector<8x128xf32> to vector<8x128xbf16>
      %c0_63 = arith.constant 0 : index
      %c0_64 = arith.constant 0 : index
      %c0_65 = arith.constant 0 : index
      %119 = vector.load %arg13[%c0_63, %c0_64, %c0_65] : memref<1x128x384xbf16, #tpu.memory_space<vmem>>, vector<1x128x384xbf16>
      %120 = vector.shape_cast %119 : vector<1x128x384xbf16> to vector<128x384xbf16>
      %cst_66 = arith.constant dense<0.000000e+00> : vector<8x384xf32>
      %121 = tpu.matmul %118, %120, %cst_66 {dimension_numbers = #tpu.dot_dimension_numbers<[1], [0], [0], [1], [0, 0, 1, 1], [], []>} : vector<8x128xbf16>, vector<128x384xbf16>, vector<8x384xf32> -> vector<8x384xf32>
      %c0_67 = arith.constant 0 : index
      %c0_68 = arith.constant 0 : index
      %c0_69 = arith.constant 0 : index
      %122 = vector.load %arg14[%c0_67, %c0_68, %c0_69] : memref<1x1x384xf32, #tpu.memory_space<vmem>>, vector<1x1x384xf32>
      %123 = vector.shape_cast %122 : vector<1x1x384xf32> to vector<1x384xf32>
      %124 = vector.broadcast %123 : vector<1x384xf32> to vector<8x384xf32>
      %125 = arith.addf %121, %124 : vector<8x384xf32>
      %126 = vector.extract_strided_slice %125 {offsets = [0, 0], sizes = [8, 128], strides = [1, 1]} : vector<8x384xf32> to vector<8x128xf32>
      %cst_70 = arith.constant 0.353553385 : f32
      %127 = vector.broadcast %cst_70 : f32 to vector<8x128xf32>
      %128 = arith.mulf %126, %127 : vector<8x128xf32>
      %129 = arith.truncf %128 : vector<8x128xf32> to vector<8x128xbf16>
      %130 = vector.extract_strided_slice %125 {offsets = [0, 128], sizes = [8, 128], strides = [1, 1]} : vector<8x384xf32> to vector<8x128xf32>
      %131 = arith.truncf %130 : vector<8x128xf32> to vector<8x128xbf16>
      %132 = vector.extract_strided_slice %125 {offsets = [0, 256], sizes = [8, 128], strides = [1, 1]} : vector<8x384xf32> to vector<8x128xf32>
      %133 = arith.truncf %132 : vector<8x128xf32> to vector<8x128xbf16>
      %c1_i32 = arith.constant 1 : i32
      %134 = arith.muli %arg0, %c1_i32 : i32
      %c0_i32_71 = arith.constant 0 : i32
      %135 = arith.addi %134, %c0_i32_71 : i32
      %136 = arith.index_cast %135 : i32 to index
      %c0_72 = arith.constant 0 : index
      %137 = vector.load %arg6[%136, %c0_72] : memref<2x128xf32, #tpu.memory_space<vmem>>, vector<1x8xf32>
      %138 = vector.extract_strided_slice %129 {offsets = [0, 0], sizes = [8, 8], strides = [1, 1]} : vector<8x128xbf16> to vector<8x8xbf16>
      %139 = vector.extract_strided_slice %131 {offsets = [0, 0], sizes = [8, 8], strides = [1, 1]} : vector<8x128xbf16> to vector<8x8xbf16>
      %cst_73 = arith.constant dense<0.000000e+00> : vector<8x8xf32>
      %140 = tpu.matmul %138, %139, %cst_73 {dimension_numbers = #tpu.dot_dimension_numbers<[1], [1], [0], [0], [0, 0, 1, 0], [], []>} : vector<8x8xbf16>, vector<8x8xbf16>, vector<8x8xf32> -> vector<8x8xf32>
      %141 = vector.broadcast %137 : vector<1x8xf32> to vector<8x8xf32>
      %142 = arith.addf %140, %141 : vector<8x8xf32>
      %cst_74 = arith.constant dense<0xFF800000> : vector<8xf32>
      %143 = vector.multi_reduction <maximumf>, %142, %cst_74 [1] : vector<8x8xf32> to vector<8xf32>
      %144 = vector.shape_cast %143 : vector<8xf32> to vector<8x1xf32>
      %145 = vector.broadcast %144 : vector<8x1xf32> to vector<8x8xf32>
      %146 = arith.subf %142, %145 : vector<8x8xf32>
      %147 = math.exp %146 : vector<8x8xf32>
      %cst_75 = arith.constant dense<0.000000e+00> : vector<8xf32>
      %148 = vector.multi_reduction <add>, %147, %cst_75 [1] : vector<8x8xf32> to vector<8xf32>
      %149 = vector.shape_cast %148 : vector<8xf32> to vector<8x1xf32>
      %150 = vector.broadcast %149 : vector<8x1xf32> to vector<8x8xf32>
      %151 = arith.divf %147, %150 : vector<8x8xf32>
      %152 = arith.truncf %151 : vector<8x8xf32> to vector<8x8xbf16>
      %153 = vector.extract_strided_slice %133 {offsets = [0, 0], sizes = [8, 8], strides = [1, 1]} : vector<8x128xbf16> to vector<8x8xbf16>
      %cst_76 = arith.constant dense<0.000000e+00> : vector<8x8xf32>
      %154 = tpu.matmul %152, %153, %cst_76 {dimension_numbers = #tpu.dot_dimension_numbers<[1], [0], [0], [1], [0, 0, 1, 1], [], []>} : vector<8x8xbf16>, vector<8x8xbf16>, vector<8x8xf32> -> vector<8x8xf32>
      %155 = vector.extract_strided_slice %129 {offsets = [0, 8], sizes = [8, 8], strides = [1, 1]} : vector<8x128xbf16> to vector<8x8xbf16>
      %156 = vector.extract_strided_slice %131 {offsets = [0, 8], sizes = [8, 8], strides = [1, 1]} : vector<8x128xbf16> to vector<8x8xbf16>
      %cst_77 = arith.constant dense<0.000000e+00> : vector<8x8xf32>
      %157 = tpu.matmul %155, %156, %cst_77 {dimension_numbers = #tpu.dot_dimension_numbers<[1], [1], [0], [0], [0, 0, 1, 0], [], []>} : vector<8x8xbf16>, vector<8x8xbf16>, vector<8x8xf32> -> vector<8x8xf32>
      %158 = vector.broadcast %137 : vector<1x8xf32> to vector<8x8xf32>
      %159 = arith.addf %157, %158 : vector<8x8xf32>
      %cst_78 = arith.constant dense<0xFF800000> : vector<8xf32>
      %160 = vector.multi_reduction <maximumf>, %159, %cst_78 [1] : vector<8x8xf32> to vector<8xf32>
      %161 = vector.shape_cast %160 : vector<8xf32> to vector<8x1xf32>
      %162 = vector.broadcast %161 : vector<8x1xf32> to vector<8x8xf32>
      %163 = arith.subf %159, %162 : vector<8x8xf32>
      %164 = math.exp %163 : vector<8x8xf32>
      %cst_79 = arith.constant dense<0.000000e+00> : vector<8xf32>
      %165 = vector.multi_reduction <add>, %164, %cst_79 [1] : vector<8x8xf32> to vector<8xf32>
      %166 = vector.shape_cast %165 : vector<8xf32> to vector<8x1xf32>
      %167 = vector.broadcast %166 : vector<8x1xf32> to vector<8x8xf32>
      %168 = arith.divf %164, %167 : vector<8x8xf32>
      %169 = arith.truncf %168 : vector<8x8xf32> to vector<8x8xbf16>
      %170 = vector.extract_strided_slice %133 {offsets = [0, 8], sizes = [8, 8], strides = [1, 1]} : vector<8x128xbf16> to vector<8x8xbf16>
      %cst_80 = arith.constant dense<0.000000e+00> : vector<8x8xf32>
      %171 = tpu.matmul %169, %170, %cst_80 {dimension_numbers = #tpu.dot_dimension_numbers<[1], [0], [0], [1], [0, 0, 1, 1], [], []>} : vector<8x8xbf16>, vector<8x8xbf16>, vector<8x8xf32> -> vector<8x8xf32>
      %172 = vector.extract_strided_slice %129 {offsets = [0, 16], sizes = [8, 8], strides = [1, 1]} : vector<8x128xbf16> to vector<8x8xbf16>
      %173 = vector.extract_strided_slice %131 {offsets = [0, 16], sizes = [8, 8], strides = [1, 1]} : vector<8x128xbf16> to vector<8x8xbf16>
      %cst_81 = arith.constant dense<0.000000e+00> : vector<8x8xf32>
      %174 = tpu.matmul %172, %173, %cst_81 {dimension_numbers = #tpu.dot_dimension_numbers<[1], [1], [0], [0], [0, 0, 1, 0], [], []>} : vector<8x8xbf16>, vector<8x8xbf16>, vector<8x8xf32> -> vector<8x8xf32>
      %175 = vector.broadcast %137 : vector<1x8xf32> to vector<8x8xf32>
      %176 = arith.addf %174, %175 : vector<8x8xf32>
      %cst_82 = arith.constant dense<0xFF800000> : vector<8xf32>
      %177 = vector.multi_reduction <maximumf>, %176, %cst_82 [1] : vector<8x8xf32> to vector<8xf32>
      %178 = vector.shape_cast %177 : vector<8xf32> to vector<8x1xf32>
      %179 = vector.broadcast %178 : vector<8x1xf32> to vector<8x8xf32>
      %180 = arith.subf %176, %179 : vector<8x8xf32>
      %181 = math.exp %180 : vector<8x8xf32>
      %cst_83 = arith.constant dense<0.000000e+00> : vector<8xf32>
      %182 = vector.multi_reduction <add>, %181, %cst_83 [1] : vector<8x8xf32> to vector<8xf32>
      %183 = vector.shape_cast %182 : vector<8xf32> to vector<8x1xf32>
      %184 = vector.broadcast %183 : vector<8x1xf32> to vector<8x8xf32>
      %185 = arith.divf %181, %184 : vector<8x8xf32>
      %186 = arith.truncf %185 : vector<8x8xf32> to vector<8x8xbf16>
      %187 = vector.extract_strided_slice %133 {offsets = [0, 16], sizes = [8, 8], strides = [1, 1]} : vector<8x128xbf16> to vector<8x8xbf16>
      %cst_84 = arith.constant dense<0.000000e+00> : vector<8x8xf32>
      %188 = tpu.matmul %186, %187, %cst_84 {dimension_numbers = #tpu.dot_dimension_numbers<[1], [0], [0], [1], [0, 0, 1, 1], [], []>} : vector<8x8xbf16>, vector<8x8xbf16>, vector<8x8xf32> -> vector<8x8xf32>
      %189 = vector.extract_strided_slice %129 {offsets = [0, 24], sizes = [8, 8], strides = [1, 1]} : vector<8x128xbf16> to vector<8x8xbf16>
      %190 = vector.extract_strided_slice %131 {offsets = [0, 24], sizes = [8, 8], strides = [1, 1]} : vector<8x128xbf16> to vector<8x8xbf16>
      %cst_85 = arith.constant dense<0.000000e+00> : vector<8x8xf32>
      %191 = tpu.matmul %189, %190, %cst_85 {dimension_numbers = #tpu.dot_dimension_numbers<[1], [1], [0], [0], [0, 0, 1, 0], [], []>} : vector<8x8xbf16>, vector<8x8xbf16>, vector<8x8xf32> -> vector<8x8xf32>
      %192 = vector.broadcast %137 : vector<1x8xf32> to vector<8x8xf32>
      %193 = arith.addf %191, %192 : vector<8x8xf32>
      %cst_86 = arith.constant dense<0xFF800000> : vector<8xf32>
      %194 = vector.multi_reduction <maximumf>, %193, %cst_86 [1] : vector<8x8xf32> to vector<8xf32>
      %195 = vector.shape_cast %194 : vector<8xf32> to vector<8x1xf32>
      %196 = vector.broadcast %195 : vector<8x1xf32> to vector<8x8xf32>
      %197 = arith.subf %193, %196 : vector<8x8xf32>
      %198 = math.exp %197 : vector<8x8xf32>
      %cst_87 = arith.constant dense<0.000000e+00> : vector<8xf32>
      %199 = vector.multi_reduction <add>, %198, %cst_87 [1] : vector<8x8xf32> to vector<8xf32>
      %200 = vector.shape_cast %199 : vector<8xf32> to vector<8x1xf32>
      %201 = vector.broadcast %200 : vector<8x1xf32> to vector<8x8xf32>
      %202 = arith.divf %198, %201 : vector<8x8xf32>
      %203 = arith.truncf %202 : vector<8x8xf32> to vector<8x8xbf16>
      %204 = vector.extract_strided_slice %133 {offsets = [0, 24], sizes = [8, 8], strides = [1, 1]} : vector<8x128xbf16> to vector<8x8xbf16>
      %cst_88 = arith.constant dense<0.000000e+00> : vector<8x8xf32>
      %205 = tpu.matmul %203, %204, %cst_88 {dimension_numbers = #tpu.dot_dimension_numbers<[1], [0], [0], [1], [0, 0, 1, 1], [], []>} : vector<8x8xbf16>, vector<8x8xbf16>, vector<8x8xf32> -> vector<8x8xf32>
      %cst_89 = arith.constant 0.000000e+00 : f32
      %206 = vector.broadcast %cst_89 : f32 to vector<8x96xf32>
      %207 = tpu.concatenate %154, %171, %188, %205, %206 in 1 : vector<8x8xf32>, vector<8x8xf32>, vector<8x8xf32>, vector<8x8xf32>, vector<8x96xf32> -> vector<8x128xf32>
      %208 = arith.truncf %207 : vector<8x128xf32> to vector<8x128xbf16>
      %c0_90 = arith.constant 0 : index
      %c0_91 = arith.constant 0 : index
      %209 = vector.load %arg27[%c0_90, %c0_91] : memref<8x128xbf16, #tpu.memory_space<vmem>>, vector<8x128xbf16>
      tpu.vector_store %arg27[%c0_90, %c0_91], %208 {strides = array<i32>} : memref<8x128xbf16, #tpu.memory_space<vmem>>, vector<8x128xbf16>,
      %c0_92 = arith.constant 0 : index
      %c0_93 = arith.constant 0 : index
      %210 = vector.load %arg27[%c0_92, %c0_93] : memref<8x128xbf16, #tpu.memory_space<vmem>>, vector<8x128xbf16>
      %c0_94 = arith.constant 0 : index
      %c0_95 = arith.constant 0 : index
      %c0_96 = arith.constant 0 : index
      %211 = vector.load %arg15[%c0_94, %c0_95, %c0_96] : memref<1x128x128xbf16, #tpu.memory_space<vmem>>, vector<1x128x128xbf16>
      %212 = vector.shape_cast %211 : vector<1x128x128xbf16> to vector<128x128xbf16>
      %cst_97 = arith.constant dense<0.000000e+00> : vector<8x128xf32>
      %213 = tpu.matmul %210, %212, %cst_97 {dimension_numbers = #tpu.dot_dimension_numbers<[1], [0], [0], [1], [0, 0, 1, 1], [], []>} : vector<8x128xbf16>, vector<128x128xbf16>, vector<8x128xf32> -> vector<8x128xf32>
      %c0_98 = arith.constant 0 : index
      %c0_99 = arith.constant 0 : index
      %c0_100 = arith.constant 0 : index
      %214 = vector.load %arg16[%c0_98, %c0_99, %c0_100] : memref<1x1x128xf32, #tpu.memory_space<vmem>>, vector<1x1x128xf32>
      %215 = vector.shape_cast %214 : vector<1x1x128xf32> to vector<1x128xf32>
      %216 = vector.broadcast %215 : vector<1x128xf32> to vector<8x128xf32>
      %217 = arith.addf %213, %216 : vector<8x128xf32>
      %218 = arith.addf %84, %217 : vector<8x128xf32>
      %c0_101 = arith.constant 0 : index
      %c0_102 = arith.constant 0 : index
      %219 = vector.load %arg24[%c0_101, %c0_102] : memref<8x128xf32, #tpu.memory_space<vmem>>, vector<8x128xf32>
      tpu.vector_store %arg24[%c0_101, %c0_102], %218 {strides = array<i32>} : memref<8x128xf32, #tpu.memory_space<vmem>>, vector<8x128xf32>,
      %c0_103 = arith.constant 0 : index
      %c0_104 = arith.constant 0 : index
      %c0_105 = arith.constant 0 : index
      %220 = vector.load %arg17[%c0_103, %c0_104, %c0_105] : memref<1x1x128xf32, #tpu.memory_space<vmem>>, vector<1x1x128xf32>
      %221 = vector.shape_cast %220 : vector<1x1x128xf32> to vector<1x128xf32>
      %c0_106 = arith.constant 0 : index
      %c0_107 = arith.constant 0 : index
      %c0_108 = arith.constant 0 : index
      %222 = vector.load %arg18[%c0_106, %c0_107, %c0_108] : memref<1x1x128xf32, #tpu.memory_space<vmem>>, vector<1x1x128xf32>
      %223 = vector.shape_cast %222 : vector<1x1x128xf32> to vector<1x128xf32>
      %224 = tpu.iota {dimensions = array<i32: 1>} : vector<1x128xi32>
      %c32_i32_109 = arith.constant 32 : i32
      %225 = vector.broadcast %c32_i32_109 : i32 to vector<1x128xi32>
      %226 = arith.cmpi slt, %224, %225 : vector<1x128xi32>
      %227 = arith.extui %226 : vector<1x128xi1> to vector<1x128xi32>
      %228 = arith.sitofp %227 : vector<1x128xi32> to vector<1x128xf32>
      %229 = vector.broadcast %228 : vector<1x128xf32> to vector<8x128xf32>
      %230 = arith.mulf %218, %229 : vector<8x128xf32>
      %cst_110 = arith.constant dense<0.000000e+00> : vector<8xf32>
      %231 = vector.multi_reduction <add>, %230, %cst_110 [1] : vector<8x128xf32> to vector<8xf32>
      %232 = vector.shape_cast %231 : vector<8xf32> to vector<8x1xf32>
      %cst_111 = arith.constant 3.125000e-02 : f32
      %233 = vector.broadcast %cst_111 : f32 to vector<8x1xf32>
      %234 = arith.mulf %232, %233 : vector<8x1xf32>
      %235 = vector.broadcast %234 : vector<8x1xf32> to vector<8x128xf32>
      %236 = arith.subf %218, %235 : vector<8x128xf32>
      %237 = vector.broadcast %228 : vector<1x128xf32> to vector<8x128xf32>
      %238 = arith.mulf %236, %237 : vector<8x128xf32>
      %239 = arith.mulf %238, %238 : vector<8x128xf32>
      %cst_112 = arith.constant dense<0.000000e+00> : vector<8xf32>
      %240 = vector.multi_reduction <add>, %239, %cst_112 [1] : vector<8x128xf32> to vector<8xf32>
      %241 = vector.shape_cast %240 : vector<8xf32> to vector<8x1xf32>
      %cst_113 = arith.constant 3.125000e-02 : f32
      %242 = vector.broadcast %cst_113 : f32 to vector<8x1xf32>
      %243 = arith.mulf %241, %242 : vector<8x1xf32>
      %cst_114 = arith.constant 9.99999974E-6 : f32
      %244 = vector.broadcast %cst_114 : f32 to vector<8x1xf32>
      %245 = arith.addf %243, %244 : vector<8x1xf32>
      %246 = math.rsqrt %245 : vector<8x1xf32>
      %247 = vector.broadcast %246 : vector<8x1xf32> to vector<8x128xf32>
      %248 = arith.mulf %238, %247 : vector<8x128xf32>
      %249 = vector.broadcast %221 : vector<1x128xf32> to vector<8x128xf32>
      %250 = arith.mulf %248, %249 : vector<8x128xf32>
      %251 = vector.broadcast %223 : vector<1x128xf32> to vector<8x128xf32>
      %252 = arith.addf %250, %251 : vector<8x128xf32>
      %253 = arith.truncf %252 : vector<8x128xf32> to vector<8x128xbf16>
      %c0_115 = arith.constant 0 : index
      %c0_116 = arith.constant 0 : index
      %254 = vector.load %arg25[%c0_115, %c0_116] : memref<8x128xbf16, #tpu.memory_space<vmem>>, vector<8x128xbf16>
      tpu.vector_store %arg25[%c0_115, %c0_116], %253 {strides = array<i32>} : memref<8x128xbf16, #tpu.memory_space<vmem>>, vector<8x128xbf16>,
      %cst_117 = arith.constant 0.000000e+00 : f32
      %255 = vector.broadcast %cst_117 : f32 to vector<8x128xf32>
      %c0_118 = arith.constant 0 : index
      %c0_119 = arith.constant 0 : index
      %256 = vector.load %arg26[%c0_118, %c0_119] : memref<8x128xf32, #tpu.memory_space<vmem>>, vector<8x128xf32>
      tpu.vector_store %arg26[%c0_118, %c0_119], %255 {strides = array<i32>} : memref<8x128xf32, #tpu.memory_space<vmem>>, vector<8x128xf32>,
    } else {
    }
    %c0 = arith.constant 0 : index
    %c0_1 = arith.constant 0 : index
    %3 = vector.load %arg25[%c0, %c0_1] : memref<8x128xbf16, #tpu.memory_space<vmem>>, vector<8x128xbf16>
    %c0_2 = arith.constant 0 : index
    %c0_3 = arith.constant 0 : index
    %c0_4 = arith.constant 0 : index
    %4 = vector.load %arg19[%c0_2, %c0_3, %c0_4] : memref<1x128x512xbf16, #tpu.memory_space<vmem>>, vector<1x128x512xbf16>
    %5 = vector.shape_cast %4 : vector<1x128x512xbf16> to vector<128x512xbf16>
    %cst = arith.constant dense<0.000000e+00> : vector<8x512xf32>
    %6 = tpu.matmul %3, %5, %cst {dimension_numbers = #tpu.dot_dimension_numbers<[1], [0], [0], [1], [0, 0, 1, 1], [], []>} : vector<8x128xbf16>, vector<128x512xbf16>, vector<8x512xf32> -> vector<8x512xf32>
    %c0_5 = arith.constant 0 : index
    %c0_6 = arith.constant 0 : index
    %c0_7 = arith.constant 0 : index
    %7 = vector.load %arg20[%c0_5, %c0_6, %c0_7] : memref<1x1x512xf32, #tpu.memory_space<vmem>>, vector<1x1x512xf32>
    %8 = vector.shape_cast %7 : vector<1x1x512xf32> to vector<1x512xf32>
    %9 = vector.broadcast %8 : vector<1x512xf32> to vector<8x512xf32>
    %10 = arith.addf %6, %9 : vector<8x512xf32>
    %11 = arith.mulf %10, %10 : vector<8x512xf32>
    %12 = arith.mulf %10, %11 : vector<8x512xf32>
    %cst_8 = arith.constant 4.471500e-02 : f32
    %13 = vector.broadcast %cst_8 : f32 to vector<8x512xf32>
    %14 = arith.mulf %13, %12 : vector<8x512xf32>
    %15 = arith.addf %10, %14 : vector<8x512xf32>
    %cst_9 = arith.constant 0.797884583 : f32
    %16 = vector.broadcast %cst_9 : f32 to vector<8x512xf32>
    %17 = arith.mulf %16, %15 : vector<8x512xf32>
    %18 = math.tanh %17 : vector<8x512xf32>
    %cst_10 = arith.constant 1.000000e+00 : f32
    %19 = vector.broadcast %cst_10 : f32 to vector<8x512xf32>
    %20 = arith.addf %19, %18 : vector<8x512xf32>
    %cst_11 = arith.constant 5.000000e-01 : f32
    %21 = vector.broadcast %cst_11 : f32 to vector<8x512xf32>
    %22 = arith.mulf %21, %20 : vector<8x512xf32>
    %23 = arith.mulf %10, %22 : vector<8x512xf32>
    %c0_12 = arith.constant 0 : index
    %c0_13 = arith.constant 0 : index
    %24 = vector.load %arg26[%c0_12, %c0_13] : memref<8x128xf32, #tpu.memory_space<vmem>>, vector<8x128xf32>
    %25 = arith.truncf %23 : vector<8x512xf32> to vector<8x512xbf16>
    %c0_14 = arith.constant 0 : index
    %c0_15 = arith.constant 0 : index
    %c0_16 = arith.constant 0 : index
    %26 = vector.load %arg21[%c0_14, %c0_15, %c0_16] : memref<1x512x128xbf16, #tpu.memory_space<vmem>>, vector<1x512x128xbf16>
    %27 = vector.shape_cast %26 : vector<1x512x128xbf16> to vector<512x128xbf16>
    %cst_17 = arith.constant dense<0.000000e+00> : vector<8x128xf32>
    %28 = tpu.matmul %25, %27, %cst_17 {dimension_numbers = #tpu.dot_dimension_numbers<[1], [0], [0], [1], [0, 0, 1, 1], [], []>} : vector<8x512xbf16>, vector<512x128xbf16>, vector<8x128xf32> -> vector<8x128xf32>
    %29 = arith.addf %24, %28 : vector<8x128xf32>
    %c0_18 = arith.constant 0 : index
    %c0_19 = arith.constant 0 : index
    %30 = vector.load %arg26[%c0_18, %c0_19] : memref<8x128xf32, #tpu.memory_space<vmem>>, vector<8x128xf32>
    tpu.vector_store %arg26[%c0_18, %c0_19], %29 {strides = array<i32>} : memref<8x128xf32, #tpu.memory_space<vmem>>, vector<8x128xf32>,
    %c3_i32 = arith.constant 3 : i32
    %31 = arith.cmpi eq, %arg2, %c3_i32 : i32
    %32 = arith.extui %31 : i1 to i32
    %c0_i32_20 = arith.constant 0 : i32
    %33 = arith.cmpi ne, %32, %c0_i32_20 : i32
    scf.if %33 {
      %c0_21 = arith.constant 0 : index
      %c0_22 = arith.constant 0 : index
      %34 = vector.load %arg24[%c0_21, %c0_22] : memref<8x128xf32, #tpu.memory_space<vmem>>, vector<8x128xf32>
      %c0_23 = arith.constant 0 : index
      %c0_24 = arith.constant 0 : index
      %35 = vector.load %arg26[%c0_23, %c0_24] : memref<8x128xf32, #tpu.memory_space<vmem>>, vector<8x128xf32>
      %36 = arith.addf %34, %35 : vector<8x128xf32>
      %c0_25 = arith.constant 0 : index
      %c0_26 = arith.constant 0 : index
      %c0_27 = arith.constant 0 : index
      %37 = vector.load %arg22[%c0_25, %c0_26, %c0_27] : memref<1x1x128xf32, #tpu.memory_space<vmem>>, vector<1x1x128xf32>
      %38 = vector.shape_cast %37 : vector<1x1x128xf32> to vector<1x128xf32>
      %39 = vector.broadcast %38 : vector<1x128xf32> to vector<8x128xf32>
      %40 = arith.addf %36, %39 : vector<8x128xf32>
      %c0_28 = arith.constant 0 : index
      %c0_29 = arith.constant 0 : index
      %41 = vector.load %arg23[%c0_28, %c0_29] : memref<8x128xf32, #tpu.memory_space<vmem>>, vector<8x128xf32>
      tpu.vector_store %arg23[%c0_28, %c0_29], %40 {strides = array<i32>} : memref<8x128xf32, #tpu.memory_space<vmem>>, vector<8x128xf32>,
    } else {
    }
    return
  }
  func.func @transform_0(%arg0: i32, %arg1: i32, %arg2: i32) -> (i32, i32) {
    %c0_i32 = arith.constant 0 : i32
    %c0_i32_0 = arith.constant 0 : i32
    return %arg0, %c0_i32 : i32, i32
  }
  func.func @transform_1(%arg0: i32, %arg1: i32, %arg2: i32) -> (i32, i32) {
    %c0_i32 = arith.constant 0 : i32
    %c0_i32_0 = arith.constant 0 : i32
    return %arg0, %c0_i32 : i32, i32
  }
  func.func @transform_2(%arg0: i32, %arg1: i32, %arg2: i32) -> (i32, i32) {
    %c0_i32 = arith.constant 0 : i32
    %c0_i32_0 = arith.constant 0 : i32
    return %arg0, %c0_i32 : i32, i32
  }
  func.func @transform_3(%arg0: i32, %arg1: i32, %arg2: i32) -> (i32, i32) {
    %c0_i32 = arith.constant 0 : i32
    %c0_i32_0 = arith.constant 0 : i32
    %c0_i32_1 = arith.constant 0 : i32
    return %c0_i32, %c0_i32_0 : i32, i32
  }
  func.func @transform_4(%arg0: i32, %arg1: i32, %arg2: i32) -> (i32, i32, i32) {
    %c0_i32 = arith.constant 0 : i32
    %c0_i32_0 = arith.constant 0 : i32
    %c0_i32_1 = arith.constant 0 : i32
    %c0_i32_2 = arith.constant 0 : i32
    return %c0_i32, %c0_i32_0, %c0_i32_1 : i32, i32, i32
  }
  func.func @transform_5(%arg0: i32, %arg1: i32, %arg2: i32) -> (i32, i32, i32) {
    %c0_i32 = arith.constant 0 : i32
    %c0_i32_0 = arith.constant 0 : i32
    %c0_i32_1 = arith.constant 0 : i32
    %c0_i32_2 = arith.constant 0 : i32
    return %c0_i32, %c0_i32_0, %c0_i32_1 : i32, i32, i32
  }
  func.func @transform_6(%arg0: i32, %arg1: i32, %arg2: i32) -> (i32, i32, i32) {
    %c0_i32 = arith.constant 0 : i32
    %c0_i32_0 = arith.constant 0 : i32
    %c0_i32_1 = arith.constant 0 : i32
    %c0_i32_2 = arith.constant 0 : i32
    return %c0_i32, %c0_i32_0, %c0_i32_1 : i32, i32, i32
  }
  func.func @transform_7(%arg0: i32, %arg1: i32, %arg2: i32) -> (i32, i32, i32) {
    %c0_i32 = arith.constant 0 : i32
    %c0_i32_0 = arith.constant 0 : i32
    %c0_i32_1 = arith.constant 0 : i32
    %c0_i32_2 = arith.constant 0 : i32
    return %c0_i32, %c0_i32_0, %c0_i32_1 : i32, i32, i32
  }
  func.func @transform_8(%arg0: i32, %arg1: i32, %arg2: i32) -> (i32, i32, i32) {
    %c0_i32 = arith.constant 0 : i32
    %c0_i32_0 = arith.constant 0 : i32
    %c0_i32_1 = arith.constant 0 : i32
    return %arg1, %c0_i32, %c0_i32_0 : i32, i32, i32
  }
  func.func @transform_9(%arg0: i32, %arg1: i32, %arg2: i32) -> (i32, i32, i32) {
    %c0_i32 = arith.constant 0 : i32
    %c0_i32_0 = arith.constant 0 : i32
    %c0_i32_1 = arith.constant 0 : i32
    return %arg1, %c0_i32, %c0_i32_0 : i32, i32, i32
  }
  func.func @transform_10(%arg0: i32, %arg1: i32, %arg2: i32) -> (i32, i32, i32) {
    %c0_i32 = arith.constant 0 : i32
    %c0_i32_0 = arith.constant 0 : i32
    %c0_i32_1 = arith.constant 0 : i32
    return %arg1, %c0_i32, %c0_i32_0 : i32, i32, i32
  }
  func.func @transform_11(%arg0: i32, %arg1: i32, %arg2: i32) -> (i32, i32, i32) {
    %c0_i32 = arith.constant 0 : i32
    %c0_i32_0 = arith.constant 0 : i32
    %c0_i32_1 = arith.constant 0 : i32
    return %arg1, %c0_i32, %c0_i32_0 : i32, i32, i32
  }
  func.func @transform_12(%arg0: i32, %arg1: i32, %arg2: i32) -> (i32, i32, i32) {
    %c0_i32 = arith.constant 0 : i32
    %c0_i32_0 = arith.constant 0 : i32
    %c0_i32_1 = arith.constant 0 : i32
    return %arg1, %c0_i32, %c0_i32_0 : i32, i32, i32
  }
  func.func @transform_13(%arg0: i32, %arg1: i32, %arg2: i32) -> (i32, i32, i32) {
    %c0_i32 = arith.constant 0 : i32
    %c0_i32_0 = arith.constant 0 : i32
    %c0_i32_1 = arith.constant 0 : i32
    return %arg1, %c0_i32, %c0_i32_0 : i32, i32, i32
  }
  func.func @transform_14(%arg0: i32, %arg1: i32, %arg2: i32) -> (i32, i32, i32) {
    %c0_i32 = arith.constant 0 : i32
    %c0_i32_0 = arith.constant 0 : i32
    %c0_i32_1 = arith.constant 0 : i32
    return %arg1, %c0_i32, %c0_i32_0 : i32, i32, i32
  }
  func.func @transform_15(%arg0: i32, %arg1: i32, %arg2: i32) -> (i32, i32, i32) {
    %c0_i32 = arith.constant 0 : i32
    %c0_i32_0 = arith.constant 0 : i32
    %c0_i32_1 = arith.constant 0 : i32
    return %arg1, %c0_i32, %c0_i32_0 : i32, i32, i32
  }
  func.func @transform_16(%arg0: i32, %arg1: i32, %arg2: i32) -> (i32, i32, i32) {
    %c0_i32 = arith.constant 0 : i32
    %c0_i32_0 = arith.constant 0 : i32
    return %arg1, %c0_i32, %arg2 : i32, i32, i32
  }
  func.func @transform_17(%arg0: i32, %arg1: i32, %arg2: i32) -> (i32, i32, i32) {
    %c0_i32 = arith.constant 0 : i32
    %c0_i32_0 = arith.constant 0 : i32
    return %arg1, %c0_i32, %arg2 : i32, i32, i32
  }
  func.func @transform_18(%arg0: i32, %arg1: i32, %arg2: i32) -> (i32, i32, i32) {
    %c0_i32 = arith.constant 0 : i32
    %c0_i32_0 = arith.constant 0 : i32
    return %arg1, %arg2, %c0_i32 : i32, i32, i32
  }
  func.func @transform_19(%arg0: i32, %arg1: i32, %arg2: i32) -> (i32, i32, i32) {
    %c0_i32 = arith.constant 0 : i32
    %c0_i32_0 = arith.constant 0 : i32
    %c0_i32_1 = arith.constant 0 : i32
    return %arg1, %c0_i32, %c0_i32_0 : i32, i32, i32
  }
  func.func @transform_20(%arg0: i32, %arg1: i32, %arg2: i32) -> (i32, i32) {
    %c0_i32 = arith.constant 0 : i32
    %c0_i32_0 = arith.constant 0 : i32
    return %arg0, %c0_i32 : i32, i32
  }
}

</mosaic_0001>

<bundles_post_ra>
// kernel: tpu_custom_call.1
= control target key start
LH: loop header
LB: loop body
LE: loop exit
PB: predicated region body
PF: predicated region fallthrough
CT: control target
= control target key end

     0   :  { %s5478_s0 = inlined_call_operand.hbm [shape: f32[16,128], index: 0, kind: input, shape index: {}]   ;;  %s5479_s1 = inlined_call_operand.hbm [shape: bf16[16,128], index: 1, kind: input, shape index: {}]   ;;  %s5480_s2 = inlined_call_operand.hbm [shape: f32[16,128], index: 2, kind: input, shape index: {}]   ;;  %s5481_s3 = inlined_call_operand.vmem [shape: f32[2,128], index: 3, kind: input, shape index: {}]   ;;  %s5482_s4 = inlined_call_operand.hbm [shape: bf16[1,128,128], index: 4, kind: input, shape index: {}]   ;;  %s5483_s5 = inlined_call_operand.hbm [shape: f32[1,1,128], index: 5, kind: input, shape index: {}]   ;;  %s5484_s6 = inlined_call_operand.vmem [shape: f32[1,1,128], index: 6, kind: input, shape index: {}]   ;;  %s5485_s7 = inlined_call_operand.vmem [shape: f32[1,1,128], index: 7, kind: input, shape index: {}]   ;;  %s5486_s8 = inlined_call_operand.vmem [shape: f32[2,1,128], index: 8, kind: input, shape index: {}]   ;;  %s5487_s9 = inlined_call_operand.vmem [shape: f32[2,1,128], index: 9, kind: input, shape index: {}]   ;;  %s5488_s10 = inlined_call_operand.hbm [shape: bf16[2,128,384], index: 10, kind: input, shape index: {}]   ;;  %s5489_s11 = inlined_call_operand.vmem [shape: f32[2,1,384], index: 11, kind: input, shape index: {}]   ;;  %s5490_s12 = inlined_call_operand.hbm [shape: bf16[2,128,128], index: 12, kind: input, shape index: {}]   ;;  %s5491_s13 = inlined_call_operand.vmem [shape: f32[2,1,128], index: 13, kind: input, shape index: {}]   ;;  %s5492_s14 = inlined_call_operand.vmem [shape: f32[2,1,128], index: 14, kind: input, shape index: {}]   ;;  %s5493_s15 = inlined_call_operand.vmem [shape: f32[2,1,128], index: 15, kind: input, shape index: {}]   ;;  %s5494_s16 = inlined_call_operand.hbm [shape: bf16[2,128,2048], index: 16, kind: input, shape index: {}]   ;;  %s5495_s17 = inlined_call_operand.vmem [shape: f32[2,1,2048], index: 17, kind: input, shape index: {}]   ;;  %s5496_s18 = inlined_call_operand.hbm [shape: bf16[2,2048,128], index: 18, kind: input, shape index: {}]   ;;  %s5497_s19 = inlined_call_operand.vmem [shape: f32[2,1,128], index: 19, kind: input, shape index: {}]   ;;  %s5498_s20 = inlined_call_operand.hbm [shape: f32[16,128], index: 20, kind: output, shape index: {}]  }
   0x1   :  { %5573 = sst [smem:[#allocation56_spill]] %s5478_s0 }
   0x2   :  { %5574 = sst [smem:[#allocation57_spill]] %s5479_s1 }
   0x3   :  { %5575 = sst [smem:[#allocation58_spill]] %s5480_s2 }
   0x4   :  { %5576 = sst [smem:[#allocation59_spill]] %s5481_s3 }
   0x5   :  { %5577 = sst [smem:[#allocation60_spill]] %s5482_s4 }
   0x6   :  { %5578 = sst [smem:[#allocation61_spill]] %s5483_s5 }
   0x7   :  { %5579 = sst [smem:[#allocation62_spill]] %s5484_s6 }
   0x8   :  { %5580 = sst [smem:[#allocation63_spill]] %s5485_s7 }
   0x9   :  { %5581 = sst [smem:[#allocation64_spill]] %s5486_s8 }
   0xa   :  { %5582 = sst [smem:[#allocation65_spill]] %s5487_s9 }
   0xb   :  { %5583 = sst [smem:[#allocation66_spill]] %s5488_s10 }
   0xc   :  { %5584 = sst [smem:[#allocation67_spill]] %s5489_s11 }
   0xd   :  { %5585 = sst [smem:[#allocation68_spill]] %s5490_s12 }
   0xe   :  { %5586 = sst [smem:[#allocation69_spill]] %s5491_s13 }
   0xf   :  { %5587 = sst [smem:[#allocation70_spill]] %s5492_s14 }
  0x10   :  { %5588 = sst [smem:[#allocation71_spill]] %s5493_s15 }
  0x11   :  { %5589 = sst [smem:[#allocation72_spill]] %s5494_s16 }
  0x12   :  { %5590 = sst [smem:[#allocation73_spill]] %s5495_s17 }
  0x13   :  { %5591 = sst [smem:[#allocation74_spill]] %s5496_s18 }
  0x14   :  { %5592 = sst [smem:[#allocation75_spill]] %s5497_s19 }
  0x15   :  { %5593 = sst [smem:[#allocation76_spill]] %s5498_s20 }
  0x16   :  { %25 = vsyncpa [#allocation7], 0 }
  0x17   :  { %27 = vsyncpa [#allocation7 + $0x1], 0 }
  0x18   :  { %28 = vsyncpa [#allocation10], 0 }
  0x19   :  { %30 = vsyncpa [#allocation10 + $0x1], 0 }
  0x1a   :  { %31 = vsyncpa [#allocation13], 0 }
  0x1b   :  { %32 = vsyncpa [#allocation16], 0 }
  0x1c   :  { %34 = vsyncpa [#allocation16 + $0x1], 0 }
  0x1d   :  { %35 = vsyncpa [#allocation19], 0 }
  0x1e   :  { %37 = vsyncpa [#allocation19 + $0x1], 0 }
  0x1f   :  { %38 = vsyncpa [#allocation8], 0 }
  0x20   :  { %40 = vsyncpa [#allocation8 + $0x1], 0  ;;  %s4475_s1 = smov 0   ;;  %s4477_s22 = smov 0  }
  0x21   :  { %s4479_s23 = smov 0   ;;  %s4481_s24 = smov 0  }
  0x22   :  { %s4483_s2 = smov 0   ;;  %s4485_s25 = smov 0  }
  0x23   :  { %s4487_s3 = smov 0   ;;  %s4489_s26 = smov 0  }
  0x24   :  { %s4491_s27 = smov 0   ;;  %s4493_s28 = smov 0  }
  0x25   :  { %s4495_s4 = smov 0   ;;  %s4497_s29 = smov 0  }
  0x26   :  { %s4499_s30 = smov 0   ;;  %s4501_s0 = smov 0  }
  0x27   :  { %s4503_s21 = smov 0   ;;  %s4505_s20 = smov 0  }
  0x28 LB: > { %5594 = sst [smem:[#allocation28_spill]] %s4285_s22  ;;  %s4556_s7 = sadd.s32 4294967295, %s4341_s20   ;;  %s4341_s20 = sphi %s4505_s20, %s46_s20   ;;  %s4337_s21 = sphi %s4503_s21, %s5740_s21   ;;  %s4333_s0 = sphi %s4501_s0, %s5739_s0   ;;  %s4329_s30 = sphi %s4499_s30, %s5738_s30   ;;  %s4325_s29 = sphi %s4497_s29, %s5737_s29   ;;  %s4321_s4 = sphi %s4495_s4, %s5736_s4   ;;  %s4317_s28 = sphi %s4493_s28, %s5735_s28   ;;  %s4313_s27 = sphi %s4491_s27, %s5734_s27   ;;  %s4309_s26 = sphi %s4489_s26, %s5733_s26   ;;  %s4305_s3 = sphi %s4487_s3, %s5732_s3   ;;  %s4301_s25 = sphi %s4485_s25, %s5731_s25   ;;  %s4297_s2 = sphi %s4483_s2, %s5730_s2   ;;  %s4293_s24 = sphi %s4481_s24, %s5729_s24   ;;  %s4289_s23 = sphi %s4479_s23, %s5728_s23   ;;  %s4285_s22 = sphi %s4477_s22, %s5727_s22   ;;  %s4281_s1 = sphi %s4475_s1, %s5726_s1  }
  0x29   : > { %5595 = sst [smem:[#allocation29_spill]] %s4289_s23  ;;  %p3163_p0 = scmp.ge.s32.totalorder %s4341_s20, 1 }
  0x2a   : > { %5596 = sst [smem:[#allocation30_spill]] %s4297_s2  ;;  %p5505_p1 = scmp.eq.s32.totalorder %s4556_s7, 0 }
  0x2b   : > { %5597 = sst [smem:[#allocation31_spill]] %s4301_s25  ;;  %p597_p2 = scmp.lt.s32.totalorder %s4341_s20, 17 }
  0x2c   : > { %5598 = sst [smem:[#allocation32_spill]] %s4305_s3  ;;  %s4343_s6 = smov [#allocation12]  }
  0x2d   : > { %5599 = sst [smem:[#allocation33_spill]] %s4309_s26  ;;  %p4561_p3 = pnand %p3163_p0, %p597_p2 }
  0x2e   : > { %5600 = sst [smem:[#allocation34_spill]] %s4313_s27  ;;  %s612_s17 = sshll.u32 %s4343_s6, 4  ;;  %s613_s17 = int_to_ptr.vmem [resolvable:$true] %s612_s17 }
  0x2f   : > { %5601 = sst [smem:[#allocation35_spill]] %s4317_s28  ;;  %p3551_p4 = pneg %p4561_p3 }
  0x30   : > { %5602 = sst [smem:[#allocation36_spill]] %s4321_s4  ;;  %s5612_s14 = sld [smem:[#allocation60_spill]] }
  0x31   : > { %5603 = sst [smem:[#allocation37_spill]] %s4325_s29  ;;  %p4569_p5 = pnand %p3551_p4, %p5505_p1 }
  0x32   : > { %5604 = sst [smem:[#allocation38_spill]] %s4329_s30 }
  0x33   : > { %5605 = sst [smem:[#allocation39_spill]] %s4333_s0  ;;  %p5510_p7 = pneg %p4569_p5 }
  0x34   : > { %5606 = sst [smem:[#allocation40_spill]] %s4337_s21 }
  0x35   : > { %5607 = sst [smem:[#allocation41_spill]] %s4341_s20 }
  0x36   : > { %5608 = sst [smem:[#allocation42_spill]] %s4556_s7  ;;  %s3897_s13 = scalar_lea.hbm %s5612_s14, 1024 }
  0x37   : > { %s5609_s29 = scalar_select %p4561_p3, 1, 0 }
  0x38   : > { %s5611_s19 = scalar_select %p4569_p5, 1, 0 }
  0x39   : > { %5610 = sst [smem:[#allocation43_spill]] %s5609_s29  ;;  %p3898_p6 = scmp.ne.s32.totalorder %s5612_s14, %s3897_s13 }
  0x3a   : > { %p3904_p10 = scmp.lt.u32.totalorder %s3897_s13, %s5612_s14 }
  0x3b   : > { %p3900_p8 = pnand %p5510_p7, %p3898_p6 }
  0x3d   : > { %p3901_p9 = pneg %p3900_p8 }
  0x3f   : > { %p3906_p11 = pnand %p3904_p10, %p3901_p9 }
  0x41   : > { %3909 = shalt.err (!%p3906_p11)
}
  0x42   : > { %s3910_s11 = scalar_lea.vmem %s613_s17, 1024  ;;  %p3918_p2 = scmp.lt.s32.totalorder %s613_s17, %s613_s17 }
  0x43   : > { %p3911_p12 = scmp.ne.s32.totalorder %s613_s17, %s3910_s11  ;;  %p3919_p4 = scmp.lt.s32.totalorder %s3910_s11, %s3910_s11 }
  0x45   : > { %p3913_p13 = pnand %p3911_p12, %p5510_p7  ;;  %p3920_p1 = por %p3919_p4, %p3918_p2 }
  0x47   : > { %p3914_p0 = pneg %p3913_p13 }
  0x49   : > { %p3921_p3 = pnand %p3920_p1, %p3914_p0 }
  0x4b   : > { %3924 = shalt.err (!%p3921_p3)
}
  0x4c   : > { %s5511_s8 = smov 64   ;;  %s5514_s9 = smov 4  }
  0x4d   : > { %3554 = dma.hbm_to_vmem [thread:$0]  (!%p4569_p5), %s5612_s14, 1024, %s613_s17, [#allocation13], %s5511_s8, %s5511_s8, %s5514_s9  }
  0x4e   : > { %s3162_s28 = sadd.s32 4294967294, %s4341_s20   ;;  %s5521_s6 = sadd.s32 1, %s4329_s30 }
  0x4f   : > { %s61_s11 = sadd.s32 1, %s4333_s0  ;;  %p4603_p1 = scmp.ge.s32.totalorder %s5521_s6, 4 }
  0x50   : > { %s65_s29 = sadd.s32 1, %s4337_s21  ;;  %s72_s18 = sadd.s32 1, %s4313_s27 }
  0x51   : > { %s5613_s4 = scalar_select %p4603_p1, 1, 0 }
  0x52   : > { %p79_p3 = scmp.ne.s32.totalorder %s4313_s27, %s4309_s26  ;;  %s5742_s11 = smov (!%p4603_p1, %s61_s11), %s4333_s0 }
  0x53   : > { %p5519_p6 = scmp.eq.s32.totalorder %s4341_s20, 0  ;;  %p5513_p8 = scmp.ne.s32.totalorder %s4309_s26, %s4305_s3 }
  0x54   : > { %p63_p9 = scmp.ge.s32.totalorder %s5742_s11, 2  ;;  %p5615_p11 = scmp.eq.s32.totalorder %s4556_s7, 0 }
  0x55   : > { %p4623_p10 = por %p5519_p6, %p79_p3  ;;  %p472_p13 = scmp.ne.s32.totalorder %s4289_s23, %s4285_s22 }
  0x56   : > { %p4632_p12 = por %p5615_p11, %p5513_p8  ;;  %s5744_s11 = smov (%p63_p9, %s5742_s11), 0 }
  0x57   : > { %5618 = sst [smem:[#allocation45_spill]] %s5744_s11  ;;  %s5746_s29 = smov (!%p63_p9, %s65_s29), %s4337_s21 }
  0x58   : > { %s5616_s15 = scalar_select %p4632_p12, 1, 0 }
  0x59   : > { %p478_p0 = scmp.ne.s32.totalorder %s4285_s22, %s4281_s1  ;;  %p67_p2 = scmp.ge.s32.totalorder %s5746_s29, 2 }
  0x5a   : > { %5617 = sst [smem:[#allocation44_spill]] %s5616_s15  ;;  %p584_p4 = scmp.eq.s32.totalorder %s4556_s7, 15 }
  0x5b   : > { %p4646_p7 = por %p472_p13, %p5519_p6  ;;  %p4652_p8 = por %p478_p0, %p5615_p11 }
  0x5c   : > { %s5748_s29 = smov (%p67_p2, %s5746_s29), 0  ;;  %p4661_p9 = por %p584_p4, %p79_p3 }
  0x5d   : > { %s5619_s8 = scalar_select %p4646_p7, 1, 0 }
  0x5e   : > { %s5620_s9 = scalar_select %p4652_p8, 1, 0 }
  0x5f   : > { %5622 = sst [smem:[#allocation47_spill]] %s5748_s29  ;;  %p590_p12 = scmp.eq.s32.totalorder %s3162_s28, 15 }
  0x60   : > { %5621 = sst [smem:[#allocation46_spill]] %s5620_s9  ;;  %s69_s1 = ssub.s32 %s4337_s21, %s5748_s29 }
  0x61   : > { %s5623_s17 = scalar_select %p4661_p9, 1, 0 }
  0x62   : > { %p5535_p5 = scmp.lt.s32.totalorder %s4341_s20, 16  ;;  %p70_p13 = scmp.eq.s32.totalorder %s69_s1, 0 }
  0x63   : > { %5624 = sst [smem:[#allocation48_spill]] %s5623_s17  ;;  %p5625_p6 = scmp.ne.s32.totalorder %s4309_s26, %s4305_s3 }
  0x64   : > { %s4676_s14 = sand.u32 1, %s4313_s27   ;;  %p4682_p0 = pnand %p5535_p5, %p4623_p10 }
  0x65   : > { %p4671_p1 = por %p590_p12, %p5625_p6  ;;  %s4690_s28 = sand.u32 1, %s4341_s20  }
  0x66   : > { %s5628_s9 = scalar_select %p4682_p0, 1, 0 }
  0x67   : > { %s5626_s6 = scalar_select %p4671_p1, 1, 0 }
  0x68   : > { %s4687_s17 = scalar_select %p70_p13, %s4313_s27, %s72_s18  }
  0x69   : > { %5627 = sst [smem:[#allocation49_spill]] %s5626_s6  ;;  %s3169_s1 = sshll.u32 %s4676_s14, 2 }
  0x6a   : > { %5629 = sst [smem:[#allocation50_spill]] %s4687_s17  ;;  %s3170_s29 = sshll.u32 %s4337_s21, 6 }
  0x6b   : > { %s5630_s6 = sld [smem:[#allocation57_spill]]  ;;  %s665_s13 = scalar_lea.vmem [#allocation9], %s3169_s1 }
  0x6c   : > { %s672_s26 = sshll.u32 %s665_s13, 4  ;;  %p4706_p6 = pneg %p4682_p0  ;;  %s4699_s26 = int_to_ptr.vmem [resolvable:$true] %s672_s26 }
  0x6e   : > { %s5631_s27 = scalar_select %p4706_p6, 1, 0 }
  0x71   : > { %s4697_s15 = scalar_lea.hbm %s5630_s6, %s3170_s29  ;;  %s3930_s29 = scalar_lea.hbm %s5630_s6, 128 }
  0x72   : > { %s3925_s17 = scalar_lea.hbm %s4697_s15, 64  ;;  %p3931_p2 = scmp.lt.u32.totalorder %s4697_s15, %s5630_s6 }
  0x73   : > { %p3926_p3 = scmp.ne.s32.totalorder %s4697_s15, %s3925_s17  ;;  %p3932_p4 = scmp.lt.u32.totalorder %s3930_s29, %s3925_s17 }
  0x74   : > { %p3934_p13 = scmp.lt.u32.totalorder %s3925_s17, %s4697_s15 }
  0x75   : > { %p3928_p10 = pnand %p4706_p6, %p3926_p3  ;;  %p3933_p11 = por %p3932_p4, %p3931_p2 }
  0x77   : > { %p3929_p12 = pneg %p3928_p10  ;;  %p3935_p5 = por %p3934_p13, %p3933_p11 }
  0x79   : > { %p3936_p1 = pnand %p3935_p5, %p3929_p12 }
  0x7b   : > { %3939 = shalt.err (!%p3936_p1)
}
  0x7c   : > { %s3940_s18 = scalar_lea.vmem %s4699_s26, 64  ;;  %s4346_s22 = smov [#allocation9]  }
  0x7d   : > { %p3941_p3 = scmp.ne.s32.totalorder %s4699_s26, %s3940_s18  ;;  %s3945_s3 = sshll.u32 %s4346_s22, 4  ;;  %s3946_s3 = int_to_ptr.vmem [resolvable:$false] %s3945_s3 }
  0x7e   : > { %s3947_s1 = scalar_lea.vmem %s3946_s3, 128  ;;  %p3948_p8 = scmp.lt.s32.totalorder %s4699_s26, %s3946_s3 }
  0x7f   : > { %p3943_p10 = pnand %p3941_p3, %p4706_p6  ;;  %p3949_p7 = scmp.lt.s32.totalorder %s3947_s1, %s3940_s18 }
  0x81   : > { %p3944_p9 = pneg %p3943_p10  ;;  %p3950_p2 = por %p3949_p7, %p3948_p8 }
  0x83   : > { %p3951_p4 = pnand %p3950_p2, %p3944_p9 }
  0x85   : > { %3954 = shalt.err (!%p3951_p4)
}
  0x86   : > { %s5632_s17 = scalar_lea.sflag [#allocation10], %s4690_s28  ;;  %p5633_p5 = scmp.ne.s32.totalorder %s5619_s8, 0 }
  0x87   : > { %3564 = dma.hbm_to_vmem [thread:$0]  (!%p4682_p0), %s4697_s15, 64, %s4699_s26, %s5632_s17  }
  0x88   : > { %p5634_p7 = scmp.lt.s32.totalorder %s4341_s20, 16  ;;  %s304_s29 = ssub.s32 %s4333_s0, %s5744_s11 }
  0x89   : > { %s5636_s13 = sadd.s32 1, %s4329_s30  ;;  %p5637_p8 = scmp.ne.s32.totalorder %s5613_s4, 0 }
  0x8a   : > { %p4735_p1 = pnand %p5634_p7, %p5633_p5  ;;  %p305_p9 = scmp.eq.s32.totalorder %s304_s29, 0 }
  0x8b   : > { %s5750_s13 = smov (%p5637_p8, %s5636_s13), 0  ;;  %s307_s22 = sadd.s32 1, %s4301_s25 }
  0x8c   : > { %s5635_s18 = scalar_select %p4735_p1, 1, 0 }
  0x8d   : > { %5638 = sst [smem:[#allocation51_spill]] %s5750_s13  ;;  %p314_p12 = scmp.ne.s32.totalorder %s4301_s25, %s4297_s2 }
  0x8e   : > { %p320_p11 = scmp.ne.s32.totalorder %s4297_s2, %s4293_s24  ;;  %p5640_p13 = scmp.eq.s32.totalorder %s4341_s20, 0 }
  0x8f   : > { %s4753_s26 = scalar_select %p305_p9, %s4301_s25, %s307_s22  }
  0x90   : > { %p316_p3 = por %p314_p12, %p5640_p13  ;;  %p5641_p10 = scmp.eq.s32.totalorder %s4556_s7, 0 }
  0x91   : > { %5639 = sst [smem:[#allocation52_spill]] %s4753_s26  ;;  %s461_s4 = ssub.s32 %s4329_s30, %s5750_s13 }
  0x92   : > { %p4759_p2 = por %p320_p11, %p5641_p10  ;;  %s5541_s15 = sand.u32 1, %s4301_s25  }
  0x93   : > { %s462_s3 = sor.u32 %s461_s4, %s304_s29  ;;  %s3523_s1 = smul.u32 192, %s5541_s15 }
  0x94   : > { %s5642_s8 = scalar_select %p4759_p2, 1, 0 }
  0x95   : > { %p463_p4 = scmp.eq.s32.totalorder %s462_s3, 0  ;;  %s3524_s17 = smul.u32 3072, %s4333_s0 }
  0x96   : > { %5643 = sst [smem:[#allocation53_spill]] %s5642_s8  ;;  %p5644_p5 = pmov %p5634_p7 }
  0x97   : > { %s5646_s22 = sadd.s32 1, %s4289_s23  ;;  %s5648_s10 = sld [smem:[#allocation66_spill]] }
  0x98   : > { %p4771_p7 = pnand %p5644_p5, %p316_p3  ;;  %s713_s29 = scalar_lea.vmem [#allocation15], %s3523_s1 }
  0x99   : > { %s4778_s6 = scalar_select %p463_p4, %s4289_s23, %s5646_s22  }
  0x9a   : > { %s5645_s24 = scalar_select %p4771_p7, 1, 0 }
  0x9b   : > { %5647 = sst [smem:[#allocation54_spill]] %s4778_s6  ;;  %s720_s4 = sshll.u32 %s713_s29, 4  ;;  %s4785_s4 = int_to_ptr.vmem [resolvable:$true] %s720_s4 }
  0x9c   : > { %s5557_s3 = scalar_lea.sflag [#allocation16], %s4690_s28  ;;  %p5555_p9 = pneg %p4771_p7 }
  0x9d   : > { %s4783_s13 = scalar_lea.hbm %s5648_s10, %s3524_s17  ;;  %s3960_s17 = scalar_lea.hbm %s5648_s10, 6144 }
  0x9e   : > { %s3955_s15 = scalar_lea.hbm %s4783_s13, 3072  ;;  %p3961_p13 = scmp.lt.u32.totalorder %s4783_s13, %s5648_s10 }
  0x9f   : > { %p3956_p8 = scmp.ne.s32.totalorder %s4783_s13, %s3955_s15  ;;  %p3962_p3 = scmp.lt.u32.totalorder %s3960_s17, %s3955_s15 }
  0xa0   : > { %p3964_p4 = scmp.lt.u32.totalorder %s3955_s15, %s4783_s13 }
  0xa1   : > { %p3958_p12 = pnand %p5555_p9, %p3956_p8  ;;  %p3963_p10 = por %p3962_p3, %p3961_p13 }
  0xa3   : > { %p3959_p11 = pneg %p3958_p12  ;;  %p3965_p5 = por %p3964_p4, %p3963_p10 }
  0xa5   : > { %p3966_p2 = pnand %p3965_p5, %p3959_p11 }
  0xa7   : > { %3969 = shalt.err (!%p3966_p2)
}
  0xa8   : > { %s3970_s1 = scalar_lea.vmem %s4785_s4, 3072  ;;  %s4347_s29 = smov [#allocation15]  }
  0xa9   : > { %p3971_p8 = scmp.ne.s32.totalorder %s4785_s4, %s3970_s1  ;;  %s3975_s11 = sshll.u32 %s4347_s29, 4  ;;  %s3976_s11 = int_to_ptr.vmem [resolvable:$false] %s3975_s11 }
  0xaa   : > { %s3977_s6 = scalar_lea.vmem %s3976_s11, 6144  ;;  %p3978_p6 = scmp.lt.s32.totalorder %s4785_s4, %s3976_s11 }
  0xab   : > { %p3973_p12 = pnand %p3971_p8, %p5555_p9  ;;  %p3979_p13 = scmp.lt.s32.totalorder %s3977_s6, %s3970_s1 }
  0xad   : > { %p3974_p0 = pneg %p3973_p12  ;;  %p3980_p3 = por %p3979_p13, %p3978_p6 }
  0xaf   : > { %p3981_p10 = pnand %p3980_p3, %p3974_p0 }
  0xb1   : > { %3984 = shalt.err (!%p3981_p10)
}
  0xb2   : > { %s4348_s15 = smov 192   ;;  %s4349_s26 = smov 12  }
  0xb3   : > { %3570 = dma.hbm_to_vmem [thread:$0]  (!%p4771_p7), %s4783_s13, 3072, %s4785_s4, %s5557_s3, %s4348_s15, %s4348_s15, %s4349_s26  }
  0xb4   : > { %s5649_s17 = sand.u32 1, %s4301_s25   ;;  %s778_s1 = sand.u32 1, %s4289_s23  }
  0xb5   : > { %s4817_s22 = sshll.u32 %s5649_s17, 6  ;;  %s4820_s29 = sshll.u32 %s778_s1, 8 }
  0xb6   : > { %s3178_s11 = sshll.u32 %s4329_s30, 2  ;;  %s5556_s6 = sshll.u32 %s4333_s0, 8 }
  0xb7   : > { %s780_s10 = scalar_lea.vmem [#allocation18], %s4820_s29  ;;  %s786_s8 = sadd.s32 %s5556_s6, %s3178_s11 }
  0xb8   : > { %s789_s20 = sshll.u32 %s780_s10, 4  ;;  %s3180_s2 = sshll.u32 %s786_s8, 6  ;;  %s4827_s20 = int_to_ptr.vmem [resolvable:$true] %s789_s20 }
  0xb9   : > { %s5650_s16 = sld [smem:[#allocation72_spill]]  ;;  %s777_s4 = scalar_lea.sflag [#allocation19], %s4690_s28 }
  0xba   : > { %p5558_p6 = pneg %p4735_p1 }
  0xbf   : > { %s4832_s13 = scalar_lea.hbm %s5650_s16, %s3180_s2  ;;  %s3990_s26 = scalar_lea.hbm %s5650_s16, 32768 }
  0xc0   : > { %s3985_s15 = scalar_lea.hbm %s4832_s13, 4096  ;;  %p3991_p4 = scmp.lt.u32.totalorder %s4832_s13, %s5650_s16 }
  0xc1   : > { %p3986_p0 = scmp.ne.s32.totalorder %s4832_s13, %s3985_s15  ;;  %p3992_p5 = scmp.lt.u32.totalorder %s3990_s26, %s3985_s15 }
  0xc2   : > { %p3994_p12 = scmp.lt.u32.totalorder %s3985_s15, %s4832_s13 }
  0xc3   : > { %p3988_p2 = pnand %p5558_p6, %p3986_p0  ;;  %p3993_p8 = por %p3992_p5, %p3991_p4 }
  0xc5   : > { %p3989_p11 = pneg %p3988_p2  ;;  %p3995_p13 = por %p3994_p12, %p3993_p8 }
  0xc7   : > { %p3996_p3 = pnand %p3995_p13, %p3989_p11 }
  0xc9   : > { %3999 = shalt.err (!%p3996_p3)
}
  0xca   : > { %s4000_s2 = scalar_lea.vmem %s4827_s20, 4096  ;;  %s4350_s17 = smov [#allocation18]  }
  0xcb   : > { %p4001_p10 = scmp.ne.s32.totalorder %s4827_s20, %s4000_s2  ;;  %s4005_s1 = sshll.u32 %s4350_s17, 4  ;;  %s4006_s1 = int_to_ptr.vmem [resolvable:$false] %s4005_s1 }
  0xcc   : > { %s4007_s11 = scalar_lea.vmem %s4006_s1, 8192  ;;  %p4008_p9 = scmp.lt.s32.totalorder %s4827_s20, %s4006_s1 }
  0xcd   : > { %p4003_p0 = pnand %p4001_p10, %p5558_p6  ;;  %p4009_p4 = scmp.lt.s32.totalorder %s4007_s11, %s4000_s2 }
  0xcf   : > { %p4004_p2 = pneg %p4003_p0  ;;  %p4010_p5 = por %p4009_p4, %p4008_p9 }
  0xd1   : > { %p4011_p8 = pnand %p4010_p5, %p4004_p2 }
  0xd3   : > { %4014 = shalt.err (!%p4011_p8)
}
  0xd4   : > { %s4351_s15 = smov 1024   ;;  %s4352_s10 = smov 256  }
  0xd5   : > { %s4353_s8 = smov 16   ;;  %s4354_s26 = smov [#allocation14]  }
  0xd6   : > { %3576 = dma.hbm_to_vmem [thread:$0]  (!%p4735_p1), %s4832_s13, 4096, %s4827_s20, %s777_s4, %s4351_s15, %s4352_s10, %s4353_s8  }
  0xd7   : > { %s626_s7 = sshll.u32 %s4354_s26, 4  ;;  %s3167_s12 = sshll.u32 %s4676_s14, 3  ;;  %s627_s7 = int_to_ptr.vmem [resolvable:$true] %s626_s7 }
  0xd8   : > { %s5651_s5 = sld [smem:[#allocation61_spill]]  ;;  %p5652_p11 = scmp.ne.s32.totalorder %s5611_s19, 0 }
  0xda   : > { %p5653_p12 = pneg %p5652_p11 }
  0xde   : > { %s4015_s1 = scalar_lea.hbm %s5651_s5, 16 }
  0xdf   : > { %p4016_p9 = scmp.ne.s32.totalorder %s5651_s5, %s4015_s1  ;;  %p4022_p10 = scmp.lt.u32.totalorder %s4015_s1, %s5651_s5 }
  0xe1   : > { %p4018_p13 = pnand %p4016_p9, %p5653_p12 }
  0xe3   : > { %p4019_p3 = pneg %p4018_p13 }
  0xe5   : > { %p4024_p0 = pnand %p4022_p10, %p4019_p3 }
  0xe7   : > { %4027 = shalt.err (!%p4024_p0)
}
  0xe8   : > { %s4028_s20 = scalar_lea.vmem %s627_s7, 16  ;;  %p5654_p4 = pmov %p5653_p12 }
  0xe9   : > { %p4029_p2 = scmp.ne.s32.totalorder %s627_s7, %s4028_s20  ;;  %s4035_s13 = scalar_lea.vmem %s627_s7, 32 }
  0xea   : > { %p4036_p6 = scmp.lt.s32.totalorder %s627_s7, %s627_s7  ;;  %p4037_p1 = scmp.lt.s32.totalorder %s4035_s13, %s4028_s20 }
  0xeb   : > { %p4031_p5 = pnand %p4029_p2, %p5654_p4 }
  0xec   : > { %p4038_p7 = por %p4037_p1, %p4036_p6 }
  0xed   : > { %p4032_p8 = pneg %p4031_p5 }
  0xef   : > { %p4039_p9 = pnand %p4038_p7, %p4032_p8 }
  0xf1   : > { %4042 = shalt.err (!%p4039_p9)
}
  0xf2   : > { %3557 = dma.hbm_to_vmem [thread:$0]  (!%p5652_p11), %s5651_s5, 16, %s627_s7, [#allocation13]  }
  0xf3   : > { %s3168_s3 = sshll.u32 %s4337_s21, 7  ;;  %s5655_s8 = sld [smem:[#allocation56_spill]] }
  0xf4   : > { %s647_s19 = scalar_lea.vmem [#allocation6], %s3167_s12  ;;  %s644_s17 = scalar_lea.sflag [#allocation7], %s4676_s14 }
  0xf5   : > { %s654_s2 = sshll.u32 %s647_s19, 4  ;;  %p5656_p7 = scmp.ne.s32.totalorder %s5631_s27, 0  ;;  %s655_s2 = int_to_ptr.vmem [resolvable:$true] %s654_s2 }
  0xf9   : > { %s4889_s26 = scalar_lea.hbm %s5655_s8, %s3168_s3  ;;  %s4048_s20 = scalar_lea.hbm %s5655_s8, 256 }
  0xfa   : > { %s4043_s1 = scalar_lea.hbm %s4889_s26, 128  ;;  %p4049_p12 = scmp.lt.u32.totalorder %s4889_s26, %s5655_s8 }
  0xfb   : > { %p4044_p1 = scmp.ne.s32.totalorder %s4889_s26, %s4043_s1  ;;  %p4050_p13 = scmp.lt.u32.totalorder %s4048_s20, %s4043_s1 }
  0xfc   : > { %p4052_p10 = scmp.lt.u32.totalorder %s4043_s1, %s4889_s26 }
  0xfd   : > { %p4046_p6 = pnand %p4044_p1, %p5656_p7  ;;  %p4051_p3 = por %p4050_p13, %p4049_p12 }
  0xff   : > { %p4047_p11 = pneg %p4046_p6  ;;  %p4053_p0 = por %p4052_p10, %p4051_p3 }
 0x101   : > { %p4054_p2 = pnand %p4053_p0, %p4047_p11 }
 0x103   : > { %4057 = shalt.err (!%p4054_p2)
}
 0x104   : > { %s4058_s16 = scalar_lea.vmem %s655_s2, 128  ;;  %s4355_s15 = smov [#allocation6]  }
 0x105   : > { %p4059_p4 = scmp.ne.s32.totalorder %s655_s2, %s4058_s16  ;;  %s4063_s10 = sshll.u32 %s4355_s15, 4  ;;  %s4064_s10 = int_to_ptr.vmem [resolvable:$false] %s4063_s10 }
 0x106   : > { %s4065_s19 = scalar_lea.vmem %s4064_s10, 256  ;;  %p4066_p9 = scmp.lt.s32.totalorder %s655_s2, %s4064_s10 }
 0x107   : > { %p4061_p5 = pnand %p4059_p4, %p5656_p7  ;;  %p4067_p1 = scmp.lt.s32.totalorder %s4065_s19, %s4058_s16 }
 0x109   : > { %p4062_p8 = pneg %p4061_p5  ;;  %p4068_p6 = por %p4067_p1, %p4066_p9 }
 0x10b   : > { %p4069_p12 = pnand %p4068_p6, %p4062_p8 }
 0x10d   : > { %4072 = shalt.err (!%p4069_p12)
}
 0x10e   : > { %p5657_p13 = scmp.ne.s32.totalorder %s5628_s9, 0  ;;  %s5658_s11 = sld [smem:[#allocation58_spill]] }
 0x10f   : > { %s683_s13 = scalar_lea.vmem [#allocation11], %s3167_s12  ;;  %s3327_s16 = sshll.u32 %s4333_s0, 10 }
 0x110   : > { %3561 = dma.hbm_to_vmem [thread:$0]  (!%p5657_p13), %s4889_s26, 128, %s655_s2, %s644_s17  }
 0x111   : > { %s690_s6 = sshll.u32 %s683_s13, 4  ;;  %s691_s6 = int_to_ptr.vmem [resolvable:$true] %s690_s6 }
 0x114   : > { %s4916_s20 = scalar_lea.hbm %s5658_s11, %s3168_s3  ;;  %s4078_s17 = scalar_lea.hbm %s5658_s11, 256 }
 0x115   : > { %s4073_s15 = scalar_lea.hbm %s4916_s20, 128  ;;  %p4079_p0 = scmp.lt.u32.totalorder %s4916_s20, %s5658_s11 }
 0x116   : > { %p4074_p11 = scmp.ne.s32.totalorder %s4916_s20, %s4073_s15  ;;  %p4080_p2 = scmp.lt.u32.totalorder %s4078_s17, %s4073_s15 }
 0x117   : > { %p4082_p5 = scmp.lt.u32.totalorder %s4073_s15, %s4916_s20 }
 0x118   : > { %p4076_p3 = pnand %p4074_p11, %p5656_p7  ;;  %p4081_p4 = por %p4080_p2, %p4079_p0 }
 0x11a   : > { %p4077_p10 = pneg %p4076_p3  ;;  %p4083_p8 = por %p4082_p5, %p4081_p4 }
 0x11c   : > { %p4084_p9 = pnand %p4083_p8, %p4077_p10 }
 0x11e   : > { %4087 = shalt.err (!%p4084_p9)
}
 0x11f   : > { %s4088_s14 = scalar_lea.vmem %s691_s6, 128  ;;  %s4356_s12 = smov [#allocation11]  }
 0x120   : > { %p4089_p1 = scmp.ne.s32.totalorder %s691_s6, %s4088_s14  ;;  %s4093_s19 = sshll.u32 %s4356_s12, 4  ;;  %s4094_s19 = int_to_ptr.vmem [resolvable:$false] %s4093_s19 }
 0x121   : > { %s4095_s1 = scalar_lea.vmem %s4094_s19, 256  ;;  %p4096_p11 = scmp.lt.s32.totalorder %s691_s6, %s4094_s19 }
 0x122   : > { %p4091_p6 = pnand %p4089_p1, %p5656_p7  ;;  %p4097_p3 = scmp.lt.s32.totalorder %s4095_s1, %s4088_s14 }
 0x124   : > { %p4092_p12 = pneg %p4091_p6  ;;  %p4098_p13 = por %p4097_p3, %p4096_p11 }
 0x126   : > { %p4099_p0 = pnand %p4098_p13, %p4092_p12 }
 0x128   : > { %4102 = shalt.err (!%p4099_p0)
}
 0x129   : > { %p5659_p2 = scmp.ne.s32.totalorder %s5628_s9, 0  ;;  %s5660_s7 = scalar_lea.sflag [#allocation10], %s4690_s28 }
 0x12a   : > { %s5661_s15 = sld [smem:[#allocation68_spill]]  ;;  %s741_s2 = scalar_lea.vmem [#allocation17], %s4817_s22 }
 0x12b   : > { %3567 = dma.hbm_to_vmem [thread:$0]  (!%p5659_p2), %s4916_s20, 128, %s691_s6, %s5660_s7  }
 0x12c   : > { %s748_s17 = sshll.u32 %s741_s2, 4  ;;  %p5662_p13 = scmp.ne.s32.totalorder %s5645_s24, 0  ;;  %s4946_s17 = int_to_ptr.vmem [resolvable:$true] %s748_s17 }
 0x12e   : > { %p5663_p10 = pneg %p5662_p13 }
 0x130   : > { %s4943_s26 = scalar_lea.hbm %s5661_s15, %s3327_s16  ;;  %s4108_s3 = scalar_lea.hbm %s5661_s15, 2048 }
 0x131   : > { %s4103_s9 = scalar_lea.hbm %s4943_s26, 1024  ;;  %p4109_p8 = scmp.lt.u32.totalorder %s4943_s26, %s5661_s15 }
 0x132   : > { %p4104_p7 = scmp.ne.s32.totalorder %s4943_s26, %s4103_s9  ;;  %p4110_p9 = scmp.lt.u32.totalorder %s4108_s3, %s4103_s9 }
 0x133   : > { %p4112_p6 = scmp.lt.u32.totalorder %s4103_s9, %s4943_s26 }
 0x134   : > { %p4106_p4 = pnand %p4104_p7, %p5663_p10  ;;  %p4111_p1 = por %p4110_p9, %p4109_p8 }
 0x136   : > { %p4107_p5 = pneg %p4106_p4  ;;  %p4113_p12 = por %p4112_p6, %p4111_p1 }
 0x138   : > { %p4114_p11 = pnand %p4113_p12, %p4107_p5 }
 0x13a   : > { %4117 = shalt.err (!%p4114_p11)
}
 0x13b   : > { %s4118_s22 = scalar_lea.vmem %s4946_s17, 1024  ;;  %p5664_p0 = pmov %p5663_p10 }
 0x13c   : > { %p4119_p3 = scmp.ne.s32.totalorder %s4946_s17, %s4118_s22  ;;  %s4357_s14 = smov [#allocation17]  }
 0x13d   : > { %s4123_s12 = sshll.u32 %s4357_s14, 4  ;;  %s4124_s12 = int_to_ptr.vmem [resolvable:$false] %s4123_s12 }
 0x13e   : > { %p4121_p2 = pnand %p4119_p3, %p5664_p0  ;;  %s4125_s19 = scalar_lea.vmem %s4124_s12, 2048 }
 0x13f   : > { %p4126_p10 = scmp.lt.s32.totalorder %s4946_s17, %s4124_s12  ;;  %p4127_p4 = scmp.lt.s32.totalorder %s4125_s19, %s4118_s22 }
 0x140   : > { %p4122_p7 = pneg %p4121_p2 }
 0x141   : > { %p4128_p8 = por %p4127_p4, %p4126_p10 }
 0x143   : > { %p4129_p9 = pnand %p4128_p8, %p4122_p7 }
 0x145   : > { %4132 = shalt.err (!%p4129_p9)
}
 0x146   : > { %s5665_s1 = smov 4   ;;  %s5666_s7 = smov 64  }
 0x147   : > { %s5667_s27 = scalar_lea.sflag [#allocation16], %s4690_s28  ;;  %s3182_s13 = sshll.u32 %s4329_s30, 6 }
 0x148   : > { %3573 = dma.hbm_to_vmem [thread:$0]  (!%p5662_p13), %s4943_s26, 1024, %s4946_s17, %s5667_s27, %s5666_s7, %s5666_s7, %s5665_s1  }
 0x149   : > { %s815_s2 = scalar_lea.vmem [#allocation20], %s4820_s29  ;;  %s5668_s20 = sshll.u32 %s4333_s0, 8 }
 0x14a   : > { %s824_s9 = sshll.u32 %s815_s2, 4  ;;  %s821_s6 = sadd.s32 %s3182_s13, %s5668_s20  ;;  %s4980_s9 = int_to_ptr.vmem [resolvable:$true] %s824_s9 }
 0x14b   : > { %s3184_s24 = sshll.u32 %s821_s6, 6  ;;  %s5669_s10 = sld [smem:[#allocation74_spill]] }
 0x14c   : > { %p5670_p13 = scmp.ne.s32.totalorder %s5635_s18, 0 }
 0x14e   : > { %p5671_p1 = pneg %p5670_p13 }
 0x151   : > { %s4985_s22 = scalar_lea.hbm %s5669_s10, %s3184_s24  ;;  %s4138_s17 = scalar_lea.hbm %s5669_s10, 32768 }
 0x152   : > { %s4133_s14 = scalar_lea.hbm %s4985_s22, 4096  ;;  %p4139_p11 = scmp.lt.u32.totalorder %s4985_s22, %s5669_s10 }
 0x153   : > { %p4134_p5 = scmp.ne.s32.totalorder %s4985_s22, %s4133_s14  ;;  %p4140_p3 = scmp.lt.u32.totalorder %s4138_s17, %s4133_s14 }
 0x154   : > { %p4142_p2 = scmp.lt.u32.totalorder %s4133_s14, %s4985_s22 }
 0x155   : > { %p4136_p6 = pnand %p4134_p5, %p5671_p1  ;;  %p4141_p0 = por %p4140_p3, %p4139_p11 }
 0x157   : > { %p4137_p12 = pneg %p4136_p6  ;;  %p4143_p7 = por %p4142_p2, %p4141_p0 }
 0x159   : > { %p4144_p10 = pnand %p4143_p7, %p4137_p12 }
 0x15b   : > { %4147 = shalt.err (!%p4144_p10)
}
 0x15c   : > { %s4148_s27 = scalar_lea.vmem %s4980_s9, 4096  ;;  %p5672_p8 = pmov %p5671_p1 }
 0x15d   : > { %p4149_p4 = scmp.ne.s32.totalorder %s4980_s9, %s4148_s27  ;;  %s4358_s13 = smov [#allocation20]  }
 0x15e   : > { %s4153_s2 = sshll.u32 %s4358_s13, 4  ;;  %s4154_s2 = int_to_ptr.vmem [resolvable:$false] %s4153_s2 }
 0x15f   : > { %p4151_p9 = pnand %p4149_p4, %p5672_p8  ;;  %s4155_s20 = scalar_lea.vmem %s4154_s2, 8192 }
 0x160   : > { %p4156_p1 = scmp.lt.s32.totalorder %s4980_s9, %s4154_s2  ;;  %p4157_p6 = scmp.lt.s32.totalorder %s4155_s20, %s4148_s27 }
 0x161   : > { %p4152_p5 = pneg %p4151_p9 }
 0x162   : > { %p4158_p11 = por %p4157_p6, %p4156_p1 }
 0x164   : > { %p4159_p3 = pnand %p4158_p11, %p4152_p5 }
 0x166   : > { %4162 = shalt.err (!%p4159_p3)
}
 0x167   : > { %3579 = dma.hbm_to_vmem [thread:$0]  (!%p5670_p13), %s4985_s22, 4096, %s4980_s9, %s777_s4, %s5666_s7, %s5666_s7, %s5665_s1  }
 0x168   : > { %s5673_s6 = sld [smem:[#allocation43_spill]] }
 0x16e   : > { %p5674_p12 = scmp.ne.s32.totalorder %s5673_s6, 0 }
 0x170   : > { %842 = sbr.rel (%p5674_p12) target bundleno = 5113 (0x13f9), region = 100 }
 0x177   : > { %s5675_s24 = sld [smem:[#allocation33_spill]]  ;;  %s5676_s3 = sld [smem:[#allocation44_spill]] }
 0x17d   : > { %s5018_s16 = sand.u32 1, %s5675_s24   ;;  %p5678_p0 = scmp.ne.s32.totalorder %s5676_s3, 0 }
 0x17e   : > { %5677 = sst [smem:[#allocation55_spill]] %s5018_s16  ;;  %s5021_s14 = sshll.u32 %s5018_s16, 3 }
 0x17f   : > { %s845_s18 = scalar_lea.sflag [#allocation7], %s5018_s16 }
 0x180   : > { %4256 = dma.done.wait (%p5678_p0), %s845_s18, 128  }
 0x181   : > { %4258 = vsyncadd (%p5678_p0), %s845_s18, 4294967168  ;;  %s5679_s28 = sld [smem:[#allocation42_spill]]  ;;  %s3187_s1 = sshll.u32 %s5018_s16, 2 }
 0x182   : > { %s5031_s9 = scalar_lea.vmem [#allocation9], %s3187_s1 }
 0x187   : > { %s853_s4 = sand.u32 1, %s5679_s28  }
 0x188   : > { %s854_s7 = scalar_lea.sflag [#allocation10], %s853_s4 }
 0x189   : > { %4260 = dma.done.wait (%p5678_p0), %s854_s7, 192  }
 0x18a   : > { %4262 = vsyncadd (%p5678_p0), %s854_s7, 4294967104  ;;  %p5680_p13 = scmp.eq.s32.totalorder %s5679_s28, 0 }
 0x18c   : > { %4264 = dma.done.wait (%p5680_p13), [#allocation13], 1040   ;;  %p5681_p2 = pmov %p5680_p13 }
 0x18d   : > { %s5682_s26 = sld [smem:[#allocation30_spill]]  ;;  %s880_s27 = scalar_lea.sflag [#allocation16], %s853_s4 }
 0x18e   : > { %4266 = vsyncadd (%p5681_p2), [#allocation13], 4294966256  ;;  %s5683_s17 = sld [smem:[#allocation53_spill]] }
 0x193   : > { %s881_s12 = sand.u32 1, %s5682_s26  }
 0x194   : > { %s3525_s19 = smul.u32 192, %s881_s12  ;;  %p5684_p7 = scmp.ne.s32.totalorder %s5683_s17, 0 }
 0x196   : > { %s5043_s13 = scalar_lea.vmem [#allocation15], %s3525_s19 }
 0x197   : > { %4268 = dma.done.wait (%p5684_p7), %s880_s27, 4096  }
 0x198   : > { %4270 = vsyncadd (%p5684_p7), %s880_s27, 4294963200  ;;  %s5685_s2 = sld [smem:[#allocation28_spill]]  ;;  %s5686_s20 = sld [smem:[#allocation46_spill]] }
 0x199   : > { %s3191_s6 = sshll.u32 %s881_s12, 6  ;;  %s898_s28 = scalar_lea.sflag [#allocation19], %s853_s4 }
 0x19a   : > { %s5050_s18 = scalar_lea.vmem [#allocation17], %s3191_s6 }
 0x19e   : > { %s899_s24 = sand.u32 1, %s5685_s2   ;;  %p5687_p10 = scmp.ne.s32.totalorder %s5686_s20, 0 }
 0x19f   : > { %s3192_s3 = sshll.u32 %s899_s24, 8 }
 0x1a0   : > { %s5052_s1 = scalar_lea.vmem [#allocation18], %s3192_s3 }
 0x1a1   : > { %4272 = dma.done.wait (%p5687_p10), %s898_s28, 8192  }
 0x1a2   : > { %4274 = vsyncadd (%p5687_p10), %s898_s28, 4294959104  ;;  %s5688_s7 = sld [smem:[#allocation36_spill]]  ;;  %s5689_s26 = sld [smem:[#allocation35_spill]] }
 0x1a3   : > { %s5690_s19 = sld [smem:[#allocation64_spill]]  ;;  %s5692_s5 = sld [smem:[#allocation69_spill]] }
 0x1a4   : > { %s5694_s25 = sld [smem:[#allocation71_spill]]  ;;  %s5695_s12 = sld [smem:[#allocation67_spill]] }
 0x1a5   : > { %s5696_s29 = sld [smem:[#allocation75_spill]]  ;;  %s5697_s15 = sld [smem:[#allocation73_spill]] }
 0x1a6   : > { %s5100_s21 = scalar_lea.vmem [#allocation20], %s3192_s3 }
 0x1a8   : > { %p1027_p4 = scmp.lt.s32.totalorder %s5688_s7, 1  ;;  %s3195_s17 = sshll.u32 %s5689_s26, 2 }
 0x1a9   : > { %p1050_p8 = scmp.lt.s32.totalorder %s3195_s17, 15  ;;  %p3197_p9 = scmp.ne.s32.totalorder %s5689_s26, 0 }
 0x1aa   : > { %s5752_s7 = smov (!%p1027_p4, %s5688_s7), 1  ;;  %s5698_s30 = sld [smem:[#allocation36_spill]] (!%p3197_p9) }
 0x1ab   : > { %s5754_s17 = smov (!%p1050_p8, %s3195_s17), 15  ;;  %s1029_s27 = scalar_lea.vmem %s5690_s19, %s5752_s7 }
 0x1ac   : > { %s3526_s28 = smul.u32 3, %s5752_s7  ;;  %s1039_s8 = scalar_lea.vmem %s5692_s5, %s5752_s7 }
 0x1ad   : > { %s1045_s23 = scalar_lea.vmem %s5694_s25, %s5752_s7  ;;  %s3196_s2 = sshll.u32 %s5752_s7, 4 }
 0x1ae   : > { %s5087_s19 = scalar_lea.vmem %s5695_s12, %s3526_s28  ;;  %s5090_s20 = sadd.s32 %s3196_s2, %s5754_s17 }
 0x1af   : > { %s1059_s5 = scalar_lea.vmem %s5696_s29, %s5752_s7  ;;  %s1054_s10 = scalar_lea.vmem %s5697_s15, %s5090_s20 }
 0x1b0   : > { %s5103_s25 = scalar_lea.vmem [#allocation21], %s5021_s14  ;;  %1064 = sbr.rel (%p3197_p9) target bundleno = 4571 (0x11db), region = 140 }
 0x1b1   : > { %p3198_p5 = scmp.ne.s32.totalorder (!%p3197_p9), %s5698_s30, 0 }
 0x1b7   : > { %1068 = sbr.rel (%p3198_p5) target bundleno = 446 (0x1be), region = 144  ;;  %s5699_s0 = scalar_lea.vmem (!%p3198_p5), [#allocation6], %s5021_s14 }
 0x1b8   : > { %v1069_v0 = vld [vmem:[%s5699_s0] sm:$0xff] (!%p3198_p5) }
 0x1b9   : > { %1070 = vst [vmem:[%s5103_s25] sm:$0xff] (!%p3198_p5), %v1069_v0 }
 0x1be PF: > { %v3739_v1 = vld [vmem:[#allocation12] sm:$0xff]   ;;  %v4359_v2 = vmov 0.0   ;;  %v3740_v3 = vld [vmem:[#allocation12 + $0x8] sm:$0xff]   ;;  %vm4360_vm0 = vmmov 0   ;;  %v3741_v4 = vld [vmem:[#allocation12 + $0x10] sm:$0xff]   ;;  %v1186_v11 = vlaneseq  ;;  %s5700_s16 = scalar_lea.vmem [#allocation11], %s5021_s14 }
 0x1bf   : > { %3415 = vmatprep.subr.bf16.mxu0 %v4359_v2  ;;  %2131 = vst [vmem:[#allocation4] sm:$0xff] %v4359_v2  ;;  %3431 = vmatprep.mubr.msk.bf16.mxu0 %vm4360_vm0, %v4359_v2  ;;  %v3742_v5 = vld [vmem:[#allocation12 + $0x18] sm:$0xff]   ;;  %v3743_v6 = vld [vmem:[#allocation12 + $0x20] sm:$0xff]   ;;  %v3744_v7 = vld [vmem:[#allocation12 + $0x28] sm:$0xff]   ;;  %v4361_v22 = vmov 0   ;;  %s5701_s3 = sld [smem:[#allocation62_spill]] }
 0x1c0   : > { %3416 = vmatpush3.bf16.msra.mxu0 %v3739_v1  ;;  %v3745_v8 = vld [vmem:[#allocation12 + $0x30] sm:$0xff]   ;;  %v3746_v9 = vld [vmem:[#allocation12 + $0x38] sm:$0xff]   ;;  %v1072_v10 = vld [vmem:[%s5031_s9] sm:$0xf]  ;;  %v1187_v12 = vand.u32 127, %v1186_v11  ;;  %3737 = vset.pattern.permute.xlu1 %v4361_v22  ;;  %s5702_s24 = sld [smem:[#allocation63_spill]] }
 0x1c1   : > { %3417 = vmatprep.subr.bf16.mxu0 %v4359_v2  ;;  %v3199_v13 = vld [vmem:[#allocation14] ss:$0 sm:$0xff]  ;;  %v1218_v21 = vld [vmem:[%s5700_s16] sm:$0xff]  ;;  %1467 = vmatprep.mubr.bf16.mxu1 %v4361_v22  ;;  %v1071_v38 = vld [vmem:[%s5103_s25] sm:$0xff]  ;;  %s5704_s6 = sld [smem:[#allocation65_spill]]  ;;  %vm1526_vm2 = vcmask 64512  }
 0x1c2   : > { %vm1188_vm1 = vcmp.lt.s32.totalorder %v1187_v12, 32  ;;  %1221 = vperm.xlu1 %3737, %v1218_v21   ;;  %3738 = vset.pattern.permute.xlu0 %v4361_v22  ;;  %v3747_v42 = vld [vmem:[%s5043_s13 + $0x4] ss:$12 sps:$4 sm:$0xff]   ;;  %v3749_v43 = vld [vmem:[%s5043_s13] ss:$12 sps:$4 sm:$0xff]   ;;  %vm1588_vm3 = vcmask 1043456  }
 0x1c3   : > { %v5127_v15 = vsel %vm1188_vm1, 1.0, %v4359_v2  ;;  %v3750_v44 = vld [vmem:[%s5043_s13 + $0x8] ss:$12 sps:$4 sm:$0xff]   ;;  %1435 = vmatprep.subr.bf16.mxu1 %v3747_v42  ;;  %v3754_v46 = vld [vmem:[%s5043_s13 + $0x20] ss:$12 sps:$4 sm:$0xff]   ;;  %s5707_s15 = sld [smem:[#allocation59_spill]] }
 0x1c4   : > { %3418 = vmatpush3.bf16.msra.mxu0 %v3740_v3  ;;  %v3751_v45 = vld [vmem:[%s5043_s13 + $0x1c] ss:$12 sps:$4 sm:$0xff]   ;;  %1436 = vmatpush1.bf16.msra.mxu1 %v3749_v43  ;;  %v3753_v47 = vld [vmem:[%s5043_s13 + $0x18] ss:$12 sps:$4 sm:$0xff]   ;;  %v3755_v48 = vld [vmem:[%s5043_s13 + $0x34] ss:$12 sps:$4 sm:$0xff]  }
 0x1c5   : > { %3419 = vmatprep.subr.bf16.mxu0 %v4359_v2  ;;  %v3209_v32 = vld [vmem:[%s5701_s3] ss:$0 sm:$0xff]  ;;  %1437 = vmatprep.subr.bf16.mxu1 %v3751_v45  ;;  %v3758_v55 = vld [vmem:[%s5043_s13 + $0x38] ss:$12 sps:$4 sm:$0xff]   ;;  %v3761_v57 = vld [vmem:[%s5043_s13 + $0x48] ss:$12 sps:$4 sm:$0xff]  }
 0x1c6   : > { %v3210_v34 = vld [vmem:[%s5702_s24] ss:$0 sm:$0xff]  ;;  %v3759_v56 = vld [vmem:[%s5043_s13 + $0x4c] ss:$12 sps:$4 sm:$0xff]   ;;  %v3763_v59 = vld [vmem:[%s5043_s13 + $0x64] ss:$12 sps:$4 sm:$0xff]  }
 0x1c7   : > { %v3757_v54 = vld [vmem:[%s5043_s13 + $0x30] ss:$12 sps:$4 sm:$0xff]   ;;  %v3765_v60 = vld [vmem:[%s5043_s13 + $0x60] ss:$12 sps:$4 sm:$0xff]   ;;  %v3766_v61 = vld [vmem:[%s5043_s13 + $0x68] ss:$12 sps:$4 sm:$0xff]   ;;  %s5705_s29 = scalar_lea.vmem %s5704_s6, %s5752_s7 }
 0x1c8   : > { %3420 = vmatpush3.bf16.msra.mxu0 %v3741_v4  ;;  %1438 = vmatpush1.bf16.msra.mxu1 %v3753_v47  ;;  %v3762_v58 = vld [vmem:[%s5043_s13 + $0x50] ss:$12 sps:$4 sm:$0xff]   ;;  %v3769_v63 = vld [vmem:[%s5043_s13 + $0x78] ss:$12 sps:$4 sm:$0xff]   ;;  %v3770_v0 = vld [vmem:[%s5043_s13 + $0x80] ss:$12 sps:$4 sm:$0xff]  }
 0x1c9   : > { %3421 = vmatprep.subr.bf16.mxu0 %v4359_v2  ;;  %1439 = vmatprep.subr.bf16.mxu1 %v3755_v48  ;;  %v3767_v62 = vld [vmem:[%s5043_s13 + $0x7c] ss:$12 sps:$4 sm:$0xff]   ;;  %v3771_v1 = vld [vmem:[%s5043_s13 + $0x94] ss:$12 sps:$4 sm:$0xff]   ;;  %v3774_v4 = vld [vmem:[%s5043_s13 + $0x98] ss:$12 sps:$4 sm:$0xff]  }
 0x1ca   : > { %v3773_v3 = vld [vmem:[%s5043_s13 + $0x90] ss:$12 sps:$4 sm:$0xff]   ;;  %s4363_s0 = smov 112   ;;  %s4364_s16 = smov 104   ;;  %vm1978_vm4 = vcmask 130048   ;;  %vm1980_vm5 = vcmask 195584  }
 0x1cb   : > { %v1290_v22 = vld [vmem:[%s5087_s19] sm:$0x7]  ;;  %s4362_s19 = smov 120   ;;  %s4365_s14 = smov 16   ;;  %vm1982_vm6 = vcmask 261120  }
 0x1cc   : > { %3422 = vmatpush3.bf16.msra.mxu0 %v3742_v5  ;;  %1440 = vmatpush1.bf16.msra.mxu1 %v3757_v54  ;;  %v3775_v5 = vld [vmem:[%s5043_s13 + $0xac] ss:$12 sps:$4 sm:$0xff]   ;;  %s4366_s9 = smov 8   ;;  %s4367_s3 = smov 24  }
 0x1cd   : > { %3423 = vmatprep.subr.bf16.mxu0 %v4359_v2  ;;  %1441 = vmatprep.subr.bf16.mxu1 %v3759_v56  ;;  %s5709_s28 = sld [smem:[#allocation70_spill]] }
 0x1d0   : > { %3424 = vmatpush3.bf16.msra.mxu0 %v3743_v6  ;;  %1442 = vmatpush1.bf16.msra.mxu1 %v3761_v57  ;;  %v3777_v6 = vld [vmem:[%s5043_s13 + $0xa8] ss:$12 sps:$4 sm:$0xff]  }
 0x1d1   : > { %3425 = vmatprep.subr.bf16.mxu0 %v4359_v2  ;;  %1443 = vmatprep.subr.bf16.mxu1 %v3763_v59 }
 0x1d3   : > { %s5710_s4 = scalar_lea.vmem %s5709_s28, %s5752_s7 }
 0x1d4   : > { %3426 = vmatpush3.bf16.msra.mxu0 %v3744_v7  ;;  %1444 = vmatpush1.bf16.msra.mxu1 %v3765_v60  ;;  %v3778_v7 = vld [vmem:[%s5043_s13 + $0xb0] ss:$12 sps:$4 sm:$0xff]  }
 0x1d5   : > { %3427 = vmatprep.subr.bf16.mxu0 %v4359_v2  ;;  %1445 = vmatprep.subr.bf16.mxu1 %v3767_v62 }
 0x1d8   : > { %3428 = vmatpush3.bf16.msra.mxu0 %v3745_v8  ;;  %1446 = vmatpush1.bf16.msra.mxu1 %v3769_v63 }
 0x1d9   : > { %3429 = vmatprep.subr.bf16.mxu0 %v4359_v2  ;;  %1447 = vmatprep.subr.bf16.mxu1 %v3771_v1 }
 0x1dc   : > { %3430 = vmatpush3.bf16.msra.mxu0 %v3746_v9  ;;  %1448 = vmatpush1.bf16.msra.mxu1 %v3773_v3 }
 0x1dd   : > { %3435 = vmatprep.subr.bf16.mxu0 %v4359_v2  ;;  %1449 = vmatprep.subr.bf16.mxu1 %v3775_v5 }
 0x1df   : > { %3432 = vmatmul.mubr.bf16.vlgmr.msra.gmra.mrb[0].mxu0 %v1072_v10 }
 0x1e0   : > { %3451 = vmatprep.mubr.msk.bf16.mxu0 %vm4360_vm0, %v4359_v2  ;;  %3436 = vmatpush3.bf16.msra.mxu0 %v3750_v44 }
 0x1e1   : > { %3437 = vmatprep.subr.bf16.mxu0 %v4359_v2  ;;  %1450 = vmatpush1.bf16.msra.mxu1 %v3777_v6 }
 0x1e2   : > { %3455 = vmatprep.subr.bf16.mxu1 %v4359_v2 }
 0x1e4   : > { %3438 = vmatpush3.bf16.msra.mxu0 %v3754_v46 }
 0x1e5   : > { %3439 = vmatprep.subr.bf16.mxu0 %v4359_v2 }
 0x1e8   : > { %3440 = vmatpush3.bf16.msra.mxu0 %v3758_v55 }
 0x1e9   : > { %3441 = vmatprep.subr.bf16.mxu0 %v4359_v2 }
 0x1ec   : > { %3442 = vmatpush3.bf16.msra.mxu0 %v3762_v58 }
 0x1ed   : > { %3443 = vmatprep.subr.bf16.mxu0 %v4359_v2 }
 0x1f0   : > { %3444 = vmatpush3.bf16.msra.mxu0 %v3766_v61 }
 0x1f1   : > { %3445 = vmatprep.subr.bf16.mxu0 %v4359_v2 }
 0x1f4   : > { %3446 = vmatpush3.bf16.msra.mxu0 %v3770_v0 }
 0x1f5   : > { %3447 = vmatprep.subr.bf16.mxu0 %v4359_v2 }
 0x1f8   : > { %3448 = vmatpush3.bf16.msra.mxu0 %v3774_v4 }
 0x1f9   : > { %3449 = vmatprep.subr.bf16.mxu0 %v4359_v2 }
 0x1fc   : > { %3450 = vmatpush3.bf16.msra.mxu0 %v3778_v7 }
 0x1fd   : > { %3503 = vmatprep.subr.bf16.mxu0 %v4359_v2 }
 0x241   : > { %v1222_v36 = vpop.permute.xlu1 %1221 }
 0x2b2   : > { %v1178_v14 = vpop.f32.mrb[0].mxu0 }
 0x2b3   : > { %v1179_v16 = vadd.f32 %v3199_v13, %v1178_v14  ;;  %v3433_v17 = vpop.f32.mrb[1].mxu0  ;;  %v3211_v13 = vld [vmem:[%s1029_s27] ss:$0 sm:$0xff]  ;;  %s5706_s27 = sld [smem:[#allocation37_spill]] }
 0x2b4   : > { %v1181_v18 = vpop.f32.mrb[2].mxu0 }
 0x2b5   : > { %v3434_v19 = vpop.f32.mrb[3].mxu0  ;;  %v1191_v20 = vmul.f32 %v5127_v15, %v1179_v16 }
 0x2b7   : > { %1192 = vadd.xlane.f32.xlu0 %v1191_v20  ;;  %v1293_v20 = vshrl.u32 %v1186_v11, 7 }
 0x2b9   : > { %v1294_v21 = vsub.s32 0, %v1293_v20  ;;  %s1520_s30 = scalar_lea.vmem %s5707_s15, %s5706_s27 }
 0x2ba   : > { %v5219_v45 = vld [vmem:[%s1520_s30] ss:$0 sm:$0xff] }
 0x344   : > { %v1193_v23 = vpop.xlane.xlu0 %1192 }
 0x345   : > { %v1194_v24 = vmul.f32 0.03125, %v1193_v23  ;;  %v1298_v23 = vsub.s32 1, %v1293_v20 }
 0x347   : > { %v1195_v25 = vsub.f32 %v1179_v16, %v1194_v24  ;;  %v3212_v16 = vld [vmem:[%s5705_s29] ss:$0 sm:$0xff]  ;;  %v1295_v24 = vrot.slane %v1290_v22, %v1294_v21 }
 0x349   : > { %v1196_v26 = vmul.f32 %v5127_v15, %v1195_v25  ;;  %v1302_v25 = vsub.s32 2, %v1293_v20 }
 0x34b   : > { %v1197_v27 = vmul.f32 %v1196_v26, %v1196_v26 }
 0x34d   : > { %1198 = vadd.xlane.f32.xlu0 %v1197_v27 }
 0x3da   : > { %v1199_v28 = vpop.xlane.xlu0 %1198 }
 0x3db   : > { %v1200_v29 = vmul.f32 0.03125, %v1199_v28 }
 0x3dd   : > { %v1201_v30 = vadd.f32 1e-05, %v1200_v29 }
 0x3df   : > { %3787 = vrsqrt.f32 %v1201_v30 }
 0x3e9   : > { %v3788_v31 = vpop.eup %3787 }
 0x3ea   : > { %v1203_v33 = vmul.f32 %v3788_v31, %v1196_v26  ;;  %v1299_v26 = vrot.slane %v1290_v22, %v1298_v23 }
 0x3ec   : > { %v1210_v35 = vmul.f32 %v3209_v32, %v1203_v33  ;;  %v1303_v32 = vrot.slane %v1290_v22, %v1302_v25 }
 0x3ee   : > { %v1217_v37 = vadd.f32 %v3210_v34, %v1210_v35 }
 0x3f0   : > { %v1224_v39 = vmul.f32 %v1222_v36, %v1217_v37 }
 0x3f2   : > { %v5140_v40 = vadd.f32 %v1224_v39, %v1071_v38 }
 0x3f4   : > { %1226 = vst [vmem:[%s5103_s25] sm:$0xff] %v5140_v40  ;;  %v1230_v41 = vmul.f32 %v5127_v15, %v5140_v40 }
 0x3f6   : > { %1231 = vadd.xlane.f32.xlu1 %v1230_v41 }
 0x483   : > { %v1232_v49 = vpop.xlane.xlu1 %1231 }
 0x484   : > { %v1233_v50 = vmul.f32 0.03125, %v1232_v49 }
 0x486   : > { %v1234_v51 = vsub.f32 %v5140_v40, %v1233_v50 }
 0x488   : > { %v1235_v52 = vmul.f32 %v5127_v15, %v1234_v51 }
 0x48a   : > { %v1236_v53 = vmul.f32 %v1235_v52, %v1235_v52 }
 0x48c   : > { %1237 = vadd.xlane.f32.xlu0 %v1236_v53 }
 0x519   : > { %v1238_v8 = vpop.xlane.xlu0 %1237 }
 0x51a   : > { %v1239_v9 = vmul.f32 0.03125, %v1238_v8 }
 0x51c   : > { %v1240_v10 = vadd.f32 1e-05, %v1239_v9 }
 0x51e   : > { %3789 = vrsqrt.f32 %v1240_v10 }
 0x528   : > { %v3790_v12 = vpop.eup %3789 }
 0x529   : > { %v1242_v14 = vmul.f32 %v3790_v12, %v1235_v52 }
 0x52b   : > { %v1249_v17 = vmul.f32 %v3211_v13, %v1242_v14 }
 0x52d   : > { %v1256_v18 = vadd.f32 %v3212_v16, %v1249_v17 }
 0x52f   : > { %v1257_v19 = vpack.c.bf16 %v1256_v18, %v1256_v18 }
 0x531   : > { %1468 = vmatmul.mubr.bf16.vlgmr.msra.gmra.mrb[0].mxu1 %v1257_v19  ;;  %3452 = vmatmul.mubr.bf16.vlgmr.msra.gmra.mrb[4].mxu0 %v1257_v19 }
 0x532   : > { %3457 = vmatprep.mubr.msk.bf16.mxu1 %vm4360_vm0, %v4359_v2  ;;  %3519 = vmatprep.mubr.msk.bf16.mxu0 %vm4360_vm0, %v4359_v2 }
 0x604   : > { %v1469_v27 = vpop.f32.mrb[0].mxu1  ;;  %v1510_v28 = vpop.f32.mrb[4].mxu0 }
 0x605   : > { %v1470_v29 = vadd.f32 %v1469_v27, %v1295_v24  ;;  %v1471_v30 = vpop.f32.mrb[1].mxu1  ;;  %v3453_v31 = vpop.f32.mrb[5].mxu0  ;;  %v1511_v41 = vadd.f32 %v1510_v28, %v1303_v32 }
 0x606   : > { %v1472_v33 = vadd.f32 %v1471_v30, %v1299_v26  ;;  %v1473_v34 = vpop.f32.mrb[2].mxu1  ;;  %v1513_v35 = vpop.f32.mrb[6].mxu0 }
 0x607   : > { %v1516_v36 = vmul.f32 0.35355338, %v1470_v29  ;;  %v1474_v37 = vpop.f32.mrb[3].mxu1  ;;  %v3454_v38 = vpop.f32.mrb[7].mxu0  ;;  %v5206_v43 = vpack.c.bf16 %v1511_v41, %v1511_v41 }
 0x608   : > { %v5197_v11 = vpack.c.bf16 %v1472_v33, %v1472_v33 }
 0x609   : > { %v5199_v39 = vpack.c.bf16 %v1516_v36, %v1516_v36  ;;  %v1590_v44 = vsel %vm1588_vm3, %v5206_v43, 0 }
 0x60a   : > { %v1531_v42 = vsel %vm1526_vm2, %v5197_v11, 0 }
 0x60b   : > { %3456 = vmatpush3.bf16.xpose.msra.mxu1 %v1531_v42  ;;  %1633 = vrot.lane.b32.xlu1 %v5199_v39, %s4362_s19 }
 0x60c   : > { %3461 = vmatprep.subr.bf16.mxu1 %v4359_v2 }
 0x612   : > { %3458 = vmatmul.mubr.msk.bf16.vlgmr.msra.gmra.mrb[4].mxu1 %vm1526_vm2, %v5199_v39 }
 0x613   : > { %3462 = vmatpush3.bf16.msra.mxu1 %v1590_v44  ;;  %3463 = vmatprep.mubr.msk.bf16.mxu1 %vm4360_vm0, %v4359_v2 }
 0x614   : > { %3467 = vmatprep.subr.bf16.mxu1 %v4359_v2 }
 0x67d   : > { %v1634_v63 = vpop.permute.xlu1 %1633 }
 0x6e5   : > { %v1567_v46 = vpop.f32.mrb[4].mxu1 }
 0x6e6   : > { %v1568_v47 = vadd.f32 %v5219_v45, %v1567_v46  ;;  %v3459_v48 = vpop.f32.mrb[5].mxu1 }
 0x6e7   : > { %v1570_v49 = vpop.f32.mrb[6].mxu1 }
 0x6e8   : > { %v3460_v50 = vpop.f32.mrb[7].mxu1  ;;  %v1573_v51 = vsel %vm1526_vm2, %v1568_v47, -inf }
 0x6e9   : > { %1574 = vmax.xlane.f32.xlu0 %v1573_v51 }
 0x776   : > { %v1575_v52 = vpop.xlane.xlu0 %1574 }
 0x777   : > { %v1576_v53 = vsub.f32 %v1568_v47, %v1575_v52 }
 0x779   : > { %v1577_v54 = vmul.f32 1.442695, %v1576_v53 }
 0x77b   : > { %3791 = vpow2.f32 %v1577_v54 }
 0x785   : > { %v3792_v55 = vpop.eup %3791 }
 0x786   : > { %v1579_v56 = vsel %vm1526_vm2, %v3792_v55, 0.0 }
 0x787   : > { %1580 = vadd.xlane.f32.xlu0 %v1579_v56 }
 0x79d   : > { %1636 = vrot.lane.b32.xlu0 %v5197_v11, %s4362_s19 }
 0x814   : > { %v1581_v57 = vpop.xlane.xlu0 %1580 }
 0x815   : > { %3793 = vrcp.f32 %v1581_v57 }
 0x818   : > { %v1637_v60 = vpop.permute.xlu0 %1636 }
 0x819   : > { %v1642_v62 = vsel %vm1526_vm2, %v1637_v60, 0 }
 0x81f   : > { %v3794_v58 = vpop.eup %3793 }
 0x820   : > { %v1583_v59 = vmul.f32 %v3794_v58, %v3792_v55 }
 0x822   : > { %v1584_v61 = vpack.c.bf16 %v1583_v59, %v1583_v59 }
 0x824   : > { %3464 = vmatmul.mubr.msk.bf16.vlgmr.msra.gmra.mrb[8].mxu1 %vm1526_vm2, %v1584_v61 }
 0x825   : > { %3468 = vmatpush3.bf16.xpose.msra.mxu1 %v1642_v62  ;;  %3469 = vmatprep.mubr.msk.bf16.mxu1 %vm4360_vm0, %v4359_v2 }
 0x826   : > { %3473 = vmatprep.subr.bf16.mxu1 %v4359_v2 }
 0x82c   : > { %3470 = vmatmul.mubr.msk.bf16.vlgmr.msra.gmra.mrb[12].mxu1 %vm1526_vm2, %v1634_v63 }
 0x82d   : > { %3475 = vmatprep.mubr.msk.bf16.mxu1 %vm4360_vm0, %v4359_v2 }
 0x8f7   : > { %v5234_v0 = vpop.f32.mrb[8].mxu1 }
 0x8f8   : > { %v3465_v1 = vpop.f32.mrb[9].mxu1 }
 0x8f9   : > { %v1629_v3 = vpop.f32.mrb[10].mxu1 }
 0x8fa   : > { %v3466_v4 = vpop.f32.mrb[11].mxu1 }
 0x8ff   : > { %v1678_v5 = vpop.f32.mrb[12].mxu1 }
 0x900   : > { %v1679_v6 = vadd.f32 %v5219_v45, %v1678_v5  ;;  %v3471_v7 = vpop.f32.mrb[13].mxu1 }
 0x901   : > { %v1681_v8 = vpop.f32.mrb[14].mxu1 }
 0x902   : > { %v3472_v9 = vpop.f32.mrb[15].mxu1  ;;  %v1684_v10 = vsel %vm1526_vm2, %v1679_v6, -inf }
 0x903   : > { %1685 = vmax.xlane.f32.xlu0 %v1684_v10  ;;  %v3779_v10 = vld [vmem:[%s5050_s18] sm:$0xff]  }
 0x904   : > { %3504 = vmatpush3.bf16.msra.mxu0 %v3779_v10 }
 0x905   : > { %3505 = vmatprep.subr.bf16.mxu0 %v4359_v2 }
 0x919   : > { %1697 = vrot.lane.b32.xlu0 %v5206_v43, %s4362_s19 }
 0x91d   : > { %1745 = vrot.lane.b32.xlu0 %v5199_v39, %s4363_s0 }
 0x990   : > { %v1686_v12 = vpop.xlane.xlu0 %1685 }
 0x991   : > { %v1687_v13 = vsub.f32 %v1679_v6, %v1686_v12  ;;  %v3780_v12 = vld [vmem:[%s5050_s18 + $0x8] sm:$0xff]  }
 0x992   : > { %3506 = vmatpush3.bf16.msra.mxu0 %v3780_v12 }
 0x993   : > { %v1688_v14 = vmul.f32 1.442695, %v1687_v13  ;;  %v3781_v13 = vld [vmem:[%s5050_s18 + $0x10] sm:$0xff]   ;;  %3507 = vmatprep.subr.bf16.mxu0 %v4359_v2 }
 0x994   : > { %v1698_v16 = vpop.permute.xlu0 %1697 }
 0x995   : > { %3795 = vpow2.f32 %v1688_v14  ;;  %v1703_v17 = vsel %vm1588_vm3, %v1698_v16, 0  ;;  %v3782_v14 = vld [vmem:[%s5050_s18 + $0x18] sm:$0xff]   ;;  %v3783_v16 = vld [vmem:[%s5050_s18 + $0x20] sm:$0xff]  }
 0x996   : > { %3474 = vmatpush3.bf16.msra.mxu1 %v1703_v17  ;;  %3508 = vmatpush3.bf16.msra.mxu0 %v3781_v13  ;;  %v3784_v17 = vld [vmem:[%s5050_s18 + $0x28] sm:$0xff]  }
 0x997   : > { %3479 = vmatprep.subr.bf16.mxu1 %v4359_v2  ;;  %3509 = vmatprep.subr.bf16.mxu0 %v4359_v2 }
 0x998   : > { %v1746_v26 = vpop.permute.xlu0 %1745 }
 0x99a   : > { %3510 = vmatpush3.bf16.msra.mxu0 %v3782_v14 }
 0x99b   : > { %3511 = vmatprep.subr.bf16.mxu0 %v4359_v2 }
 0x99e   : > { %3512 = vmatpush3.bf16.msra.mxu0 %v3783_v16 }
 0x99f   : > { %v3796_v18 = vpop.eup %3795  ;;  %3513 = vmatprep.subr.bf16.mxu0 %v4359_v2 }
 0x9a0   : > { %v1690_v19 = vsel %vm1526_vm2, %v3796_v18, 0.0 }
 0x9a1   : > { %1691 = vadd.xlane.f32.xlu1 %v1690_v19  ;;  %v3786_v19 = vld [vmem:[%s5050_s18 + $0x38] sm:$0xff]  }
 0x9a2   : > { %3514 = vmatpush3.bf16.msra.mxu0 %v3784_v17 }
 0x9a3   : > { %3515 = vmatprep.subr.bf16.mxu0 %v4359_v2 }
 0x9b2   : > { %1747 = vrot.lane.b32.xlu1 %v5197_v11, %s4363_s0 }
 0xa2e   : > { %v1692_v20 = vpop.xlane.xlu1 %1691 }
 0xa2f   : > { %3797 = vrcp.f32 %v1692_v20 }
 0xa32   : > { %v1748_v23 = vpop.permute.xlu1 %1747 }
 0xa33   : > { %v1753_v25 = vsel %vm1526_vm2, %v1748_v23, 0 }
 0xa39   : > { %v3798_v21 = vpop.eup %3797 }
 0xa3a   : > { %v1694_v22 = vmul.f32 %v3798_v21, %v3796_v18  ;;  %v3785_v18 = vld [vmem:[%s5050_s18 + $0x30] sm:$0xff]  }
 0xa3b   : > { %3516 = vmatpush3.bf16.msra.mxu0 %v3785_v18 }
 0xa3c   : > { %v1695_v24 = vpack.c.bf16 %v1694_v22, %v1694_v22  ;;  %3517 = vmatprep.subr.bf16.mxu0 %v4359_v2 }
 0xa3e   : > { %3476 = vmatmul.mubr.msk.bf16.vlgmr.msra.gmra.mrb[16].mxu1 %vm1526_vm2, %v1695_v24 }
 0xa3f   : > { %3480 = vmatpush3.bf16.xpose.msra.mxu1 %v1753_v25  ;;  %3481 = vmatprep.mubr.msk.bf16.mxu1 %vm4360_vm0, %v4359_v2 }
 0xa40   : > { %3485 = vmatprep.subr.bf16.mxu1 %v4359_v2  ;;  %3518 = vmatpush3.bf16.msra.mxu0 %v3786_v19 }
 0xa46   : > { %3482 = vmatmul.mubr.msk.bf16.vlgmr.msra.gmra.mrb[20].mxu1 %vm1526_vm2, %v1746_v26 }
 0xa47   : > { %3487 = vmatprep.mubr.msk.bf16.mxu1 %vm4360_vm0, %v4359_v2 }
 0xb11   : > { %v5255_v27 = vpop.f32.mrb[16].mxu1 }
 0xb12   : > { %v3477_v28 = vpop.f32.mrb[17].mxu1 }
 0xb13   : > { %v1742_v29 = vpop.f32.mrb[18].mxu1 }
 0xb14   : > { %v3478_v30 = vpop.f32.mrb[19].mxu1 }
 0xb19   : > { %v1789_v31 = vpop.f32.mrb[20].mxu1 }
 0xb1a   : > { %v1790_v32 = vadd.f32 %v5219_v45, %v1789_v31  ;;  %v3483_v33 = vpop.f32.mrb[21].mxu1 }
 0xb1b   : > { %v1792_v34 = vpop.f32.mrb[22].mxu1 }
 0xb1c   : > { %v3484_v35 = vpop.f32.mrb[23].mxu1  ;;  %v1795_v36 = vsel %vm1526_vm2, %v1790_v32, -inf }
 0xb1d   : > { %1796 = vmax.xlane.f32.xlu0 %v1795_v36 }
 0xb33   : > { %1807 = vrot.lane.b32.xlu0 %v5206_v43, %s4363_s0 }
 0xb37   : > { %1855 = vrot.lane.b32.xlu0 %v5199_v39, %s4364_s16 }
 0xbaa   : > { %v1797_v37 = vpop.xlane.xlu0 %1796 }
 0xbab   : > { %v1798_v38 = vsub.f32 %v1790_v32, %v1797_v37  ;;  %v3246_v32 = vld [vmem:[%s1039_s8] ss:$0 sm:$0xff] }
 0xbad   : > { %v1799_v41 = vmul.f32 1.442695, %v1798_v38 }
 0xbae   : > { %v1808_v42 = vpop.permute.xlu0 %1807 }
 0xbaf   : > { %3799 = vpow2.f32 %v1799_v41  ;;  %v1813_v44 = vsel %vm1588_vm3, %v1808_v42, 0 }
 0xbb0   : > { %3486 = vmatpush3.bf16.msra.mxu1 %v1813_v44 }
 0xbb1   : > { %3491 = vmatprep.subr.bf16.mxu1 %v4359_v2 }
 0xbb2   : > { %v1856_v53 = vpop.permute.xlu0 %1855 }
 0xbb9   : > { %v3800_v46 = vpop.eup %3799 }
 0xbba   : > { %v1801_v47 = vsel %vm1526_vm2, %v3800_v46, 0.0 }
 0xbbb   : > { %1802 = vadd.xlane.f32.xlu1 %v1801_v47 }
 0xbcc   : > { %1857 = vrot.lane.b32.xlu1 %v5197_v11, %s4364_s16 }
 0xc48   : > { %v1803_v48 = vpop.xlane.xlu1 %1802 }
 0xc49   : > { %3801 = vrcp.f32 %v1803_v48 }
 0xc4c   : > { %v1858_v50 = vpop.permute.xlu1 %1857 }
 0xc4d   : > { %v1863_v52 = vsel %vm1526_vm2, %v1858_v50, 0 }
 0xc53   : > { %v3802_v39 = vpop.eup %3801 }
 0xc54   : > { %v1805_v49 = vmul.f32 %v3802_v39, %v3800_v46 }
 0xc56   : > { %v1806_v51 = vpack.c.bf16 %v1805_v49, %v1805_v49 }
 0xc58   : > { %3488 = vmatmul.mubr.msk.bf16.vlgmr.msra.gmra.mrb[24].mxu1 %vm1526_vm2, %v1806_v51 }
 0xc59   : > { %3492 = vmatpush3.bf16.xpose.msra.mxu1 %v1863_v52  ;;  %3493 = vmatprep.mubr.msk.bf16.mxu1 %vm4360_vm0, %v4359_v2  ;;  %v3256_v52 = vld [vmem:[%s1045_s23] ss:$0 sm:$0xff] }
 0xc5a   : > { %3497 = vmatprep.subr.bf16.mxu1 %v4359_v2 }
 0xc60   : > { %3494 = vmatmul.mubr.msk.bf16.vlgmr.msra.gmra.mrb[28].mxu1 %vm1526_vm2, %v1856_v53 }
 0xc61   : > { %3499 = vmatprep.mubr.msk.bf16.mxu1 %vm4360_vm0, %v4359_v2 }
 0xd2b   : > { %v1849_v11 = vpop.f32.mrb[24].mxu1 }
 0xd2c   : > { %v3489_v54 = vpop.f32.mrb[25].mxu1 }
 0xd2d   : > { %v1852_v55 = vpop.f32.mrb[26].mxu1 }
 0xd2e   : > { %v3490_v56 = vpop.f32.mrb[27].mxu1 }
 0xd33   : > { %v1899_v57 = vpop.f32.mrb[28].mxu1 }
 0xd34   : > { %v1900_v58 = vadd.f32 %v5219_v45, %v1899_v57  ;;  %v3495_v59 = vpop.f32.mrb[29].mxu1 }
 0xd35   : > { %v1902_v60 = vpop.f32.mrb[30].mxu1 }
 0xd36   : > { %v3496_v61 = vpop.f32.mrb[31].mxu1  ;;  %v1905_v62 = vsel %vm1526_vm2, %v1900_v58, -inf }
 0xd37   : > { %1906 = vmax.xlane.f32.xlu0 %v1905_v62 }
 0xd4d   : > { %1917 = vrot.lane.b32.xlu0 %v5206_v43, %s4364_s16 }
 0xd51   : > { %1970 = vrot.lane.b32.xlu0 %v1849_v11, %s4365_s14 }
 0xdc4   : > { %v1907_v63 = vpop.xlane.xlu0 %1906 }
 0xdc5   : > { %v1908_v1 = vsub.f32 %v1900_v58, %v1907_v63 }
 0xdc7   : > { %v1909_v3 = vmul.f32 1.442695, %v1908_v1 }
 0xdc8   : > { %v1918_v4 = vpop.permute.xlu0 %1917 }
 0xdc9   : > { %3803 = vpow2.f32 %v1909_v3  ;;  %v1923_v45 = vsel %vm1588_vm3, %v1918_v4, 0 }
 0xdca   : > { %3498 = vmatpush3.bf16.msra.mxu1 %v1923_v45 }
 0xdcc   : > { %v1971_v25 = vpop.permute.xlu0 %1970 }
 0xdd3   : > { %v3804_v5 = vpop.eup %3803 }
 0xdd4   : > { %v1911_v6 = vsel %vm1526_vm2, %v3804_v5, 0.0 }
 0xdd5   : > { %1912 = vadd.xlane.f32.xlu1 %v1911_v6 }
 0xde6   : > { %1966 = vrot.lane.b32.xlu1 %v5255_v27, %s4366_s9 }
 0xe62   : > { %v1913_v43 = vpop.xlane.xlu1 %1912 }
 0xe63   : > { %3805 = vrcp.f32 %v1913_v43 }
 0xe66   : > { %v1967_v24 = vpop.permute.xlu1 %1966 }
 0xe67   : > { %v1977_v26 = vsel %vm1526_vm2, %v5234_v0, %v1967_v24 }
 0xe68   : > { %v1979_v27 = vsel %vm1978_vm4, %v1977_v26, %v1971_v25 }
 0xe6d   : > { %v3806_v7 = vpop.eup %3805 }
 0xe6e   : > { %v1915_v8 = vmul.f32 %v3806_v7, %v3804_v5 }
 0xe70   : > { %v1916_v9 = vpack.c.bf16 %v1915_v8, %v1915_v8 }
 0xe72   : > { %3500 = vmatmul.mubr.msk.bf16.vlgmr.msra.gmra.mrb[32].mxu1 %vm1526_vm2, %v1916_v9 }
 0xf45   : > { %v1959_v20 = vpop.f32.mrb[32].mxu1 }
 0xf46   : > { %1974 = vrot.lane.b32.xlu0 %v1959_v20, %s4367_s3  ;;  %v3501_v21 = vpop.f32.mrb[33].mxu1 }
 0xf47   : > { %v1962_v22 = vpop.f32.mrb[34].mxu1 }
 0xf48   : > { %v3502_v23 = vpop.f32.mrb[35].mxu1 }
 0xfb8   : > { %v1975_v28 = vpop.permute.xlu0 %1974 }
 0xfb9   : > { %v1981_v29 = vsel %vm1980_vm5, %v1979_v27, %v1975_v28 }
 0xfba   : > { %v1983_v2 = vsel %vm1982_vm6, %v1981_v29, 0.0 }
 0xfbb   : > { %v1984_v30 = vpack.c.bf16 %v1983_v2, %v1983_v2 }
 0xfbd   : > { %1985 = vst [vmem:[#allocation5] sm:$0xf] %v1984_v30 }
 0xfc4   : > { %v1986_v31 = vld [vmem:[#allocation5] sm:$0xf] }
 0xfc5   : > { %3520 = vmatmul.mubr.bf16.vlgmr.msra.gmra.mrb[8].mxu0 %v1986_v31 }
0x1098   : > { %v2092_v33 = vpop.f32.mrb[8].mxu0 }
0x1099   : > { %v2093_v34 = vadd.f32 %v3246_v32, %v2092_v33  ;;  %v3521_v35 = vpop.f32.mrb[9].mxu0 }
0x109a   : > { %v2095_v0 = vpop.f32.mrb[10].mxu0 }
0x109b   : > { %v2098_v36 = vadd.f32 %v2093_v34, %v5140_v40  ;;  %v3522_v37 = vpop.f32.mrb[11].mxu0  ;;  %v3255_v40 = vld [vmem:[%s5710_s4] ss:$0 sm:$0xff] }
0x109d   : > { %2099 = vst [vmem:[#allocation2] sm:$0xff] %v2098_v36  ;;  %v2102_v38 = vmul.f32 %v5127_v15, %v2098_v36 }
0x109f   : > { %2103 = vadd.xlane.f32.xlu1 %v2102_v38 }
0x112c   : > { %v2104_v41 = vpop.xlane.xlu1 %2103 }
0x112d   : > { %v2105_v42 = vmul.f32 0.03125, %v2104_v41 }
0x112f   : > { %v2106_v44 = vsub.f32 %v2098_v36, %v2105_v42 }
0x1131   : > { %v2107_v46 = vmul.f32 %v5127_v15, %v2106_v44 }
0x1133   : > { %v2108_v47 = vmul.f32 %v2107_v46, %v2107_v46 }
0x1135   : > { %2109 = vadd.xlane.f32.xlu0 %v2108_v47 }
0x11c2   : > { %v2110_v48 = vpop.xlane.xlu0 %2109 }
0x11c3   : > { %v2111_v39 = vmul.f32 0.03125, %v2110_v48 }
0x11c5   : > { %v2112_v49 = vadd.f32 1e-05, %v2111_v39 }
0x11c7   : > { %3807 = vrsqrt.f32 %v2112_v49 }
0x11d1   : > { %v3808_v50 = vpop.eup %3807 }
0x11d2   : > { %v2114_v51 = vmul.f32 %v3808_v50, %v2107_v46 }
0x11d4   : > { %v2121_v53 = vmul.f32 %v3255_v40, %v2114_v51 }
0x11d6   : > { %v2128_v15 = vadd.f32 %v3256_v52, %v2121_v53 }
0x11d8   : > { %v2129_v11 = vpack.c.bf16 %v2128_v15, %v2128_v15 }
0x11da   : > { %2130 = vst [vmem:[#allocation3] sm:$0xf] %v2129_v11 }
0x11db PF: > { %v3809_v54 = vld [vmem:[%s5052_s1 + $0x4] ss:$16 sps:$4 sm:$0xff]   ;;  %v3811_v55 = vld [vmem:[%s5052_s1 + $0xc] ss:$16 sps:$4 sm:$0xff]   ;;  %v4368_v56 = vmov 0  }
0x11dc   : > { %2379 = vmatprep.mubr.bf16.mxu0 %v4368_v56  ;;  %2420 = vmatprep.mubr.bf16.mxu1 %v4368_v56  ;;  %v3813_v57 = vld [vmem:[%s5052_s1] ss:$16 sps:$4 sm:$0xff]   ;;  %v3814_v58 = vld [vmem:[%s5052_s1 + $0x8] ss:$16 sps:$4 sm:$0xff]   ;;  %v3815_v59 = vld [vmem:[%s5052_s1 + $0x24] ss:$16 sps:$4 sm:$0xff]   ;;  %v2167_v56 = vlaneseq }
0x11dd   : > { %2347 = vmatprep.subr.bf16.mxu0 %v3809_v54  ;;  %2388 = vmatprep.subr.bf16.mxu1 %v3811_v55  ;;  %v3817_v60 = vld [vmem:[%s5052_s1 + $0x2c] ss:$16 sps:$4 sm:$0xff]   ;;  %v3819_v61 = vld [vmem:[%s5052_s1 + $0x20] ss:$16 sps:$4 sm:$0xff]   ;;  %v3820_v62 = vld [vmem:[%s5052_s1 + $0x28] ss:$16 sps:$4 sm:$0xff]  }
0x11de   : > { %2348 = vmatpush1.bf16.msra.mxu0 %v3813_v57  ;;  %2389 = vmatpush1.bf16.msra.mxu1 %v3814_v58  ;;  %v3821_v63 = vld [vmem:[%s5052_s1 + $0x44] ss:$16 sps:$4 sm:$0xff]   ;;  %v3823_v1 = vld [vmem:[%s5052_s1 + $0x4c] ss:$16 sps:$4 sm:$0xff]   ;;  %v3825_v3 = vld [vmem:[%s5052_s1 + $0x40] ss:$16 sps:$4 sm:$0xff]  }
0x11df   : > { %2349 = vmatprep.subr.bf16.mxu0 %v3815_v59  ;;  %2390 = vmatprep.subr.bf16.mxu1 %v3817_v60  ;;  %v3826_v4 = vld [vmem:[%s5052_s1 + $0x48] ss:$16 sps:$4 sm:$0xff]   ;;  %v3827_v45 = vld [vmem:[%s5052_s1 + $0x64] ss:$16 sps:$4 sm:$0xff]   ;;  %v3829_v5 = vld [vmem:[%s5052_s1 + $0x6c] ss:$16 sps:$4 sm:$0xff]  }
0x11e0   : > { %v3831_v6 = vld [vmem:[%s5052_s1 + $0x60] ss:$16 sps:$4 sm:$0xff]   ;;  %v3832_v43 = vld [vmem:[%s5052_s1 + $0x68] ss:$16 sps:$4 sm:$0xff]   ;;  %v3833_v7 = vld [vmem:[%s5052_s1 + $0x84] ss:$16 sps:$4 sm:$0xff]  }
0x11e1   : > { %v3835_v8 = vld [vmem:[%s5052_s1 + $0x8c] ss:$16 sps:$4 sm:$0xff]   ;;  %v3837_v9 = vld [vmem:[%s5052_s1 + $0x80] ss:$16 sps:$4 sm:$0xff]   ;;  %v3838_v10 = vld [vmem:[%s5052_s1 + $0x88] ss:$16 sps:$4 sm:$0xff]  }
0x11e2   : > { %2350 = vmatpush1.bf16.msra.mxu0 %v3819_v61  ;;  %2391 = vmatpush1.bf16.msra.mxu1 %v3820_v62  ;;  %v3839_v12 = vld [vmem:[%s5052_s1 + $0xa4] ss:$16 sps:$4 sm:$0xff]   ;;  %v3841_v13 = vld [vmem:[%s5052_s1 + $0xac] ss:$16 sps:$4 sm:$0xff]   ;;  %v3843_v14 = vld [vmem:[%s5052_s1 + $0xa0] ss:$16 sps:$4 sm:$0xff]  }
0x11e3   : > { %2351 = vmatprep.subr.bf16.mxu0 %v3821_v63  ;;  %2392 = vmatprep.subr.bf16.mxu1 %v3823_v1  ;;  %v3844_v16 = vld [vmem:[%s5052_s1 + $0xa8] ss:$16 sps:$4 sm:$0xff]   ;;  %v3845_v17 = vld [vmem:[%s5052_s1 + $0xc4] ss:$16 sps:$4 sm:$0xff]   ;;  %v3847_v18 = vld [vmem:[%s5052_s1 + $0xcc] ss:$16 sps:$4 sm:$0xff]  }
0x11e4   : > { %v3849_v19 = vld [vmem:[%s5052_s1 + $0xc0] ss:$16 sps:$4 sm:$0xff]   ;;  %v3850_v20 = vld [vmem:[%s5052_s1 + $0xc8] ss:$16 sps:$4 sm:$0xff]   ;;  %v3851_v21 = vld [vmem:[%s5052_s1 + $0xe4] ss:$16 sps:$4 sm:$0xff]  }
0x11e5   : > { %v3853_v22 = vld [vmem:[%s5052_s1 + $0xec] ss:$16 sps:$4 sm:$0xff]   ;;  %v3855_v23 = vld [vmem:[%s5052_s1 + $0xe0] ss:$16 sps:$4 sm:$0xff]   ;;  %v3856_v24 = vld [vmem:[%s5052_s1 + $0xe8] ss:$16 sps:$4 sm:$0xff]  }
0x11e6   : > { %2352 = vmatpush1.bf16.msra.mxu0 %v3825_v3  ;;  %2393 = vmatpush1.bf16.msra.mxu1 %v3826_v4  ;;  %v2132_v25 = vld [vmem:[#allocation3] sm:$0xf]  ;;  %v3865_v33 = vld [vmem:[%s5100_s21 + $0x50] sm:$0xff]   ;;  %v3869_v36 = vld [vmem:[%s5100_s21 + $0x58] sm:$0xff]   ;;  %v2168_v57 = vshrl.u32 %v2167_v56, 7 }
0x11e7   : > { %2353 = vmatprep.subr.bf16.mxu0 %v3827_v45  ;;  %2394 = vmatprep.subr.bf16.mxu1 %v3829_v5  ;;  %v3857_v26 = vld [vmem:[%s5100_s21 + $0x40] sm:$0xff]   ;;  %v3861_v2 = vld [vmem:[%s5100_s21 + $0x48] sm:$0xff]   ;;  %v3866_v34 = vld [vmem:[%s5100_s21 + $0xd0] sm:$0xff]  }
0x11e8   : > { %v3858_v27 = vld [vmem:[%s5100_s21 + $0xc0] sm:$0xff]   ;;  %v3862_v30 = vld [vmem:[%s5100_s21 + $0xc8] sm:$0xff]   ;;  %v3867_v35 = vld [vmem:[%s5100_s21 + $0x10] sm:$0xff]   ;;  %v2169_v58 = vsub.s32 0, %v2168_v57  ;;  %v2177_v59 = vsub.s32 2, %v2168_v57  ;;  %v2173_v61 = vsub.s32 1, %v2168_v57 }
0x11e9   : > { %v3859_v28 = vld [vmem:[%s5100_s21] sm:$0xff]   ;;  %v3863_v31 = vld [vmem:[%s5100_s21 + $0x8] sm:$0xff]   ;;  %v3868_v0 = vld [vmem:[%s5100_s21 + $0x90] sm:$0xff]   ;;  %v2181_v62 = vsub.s32 3, %v2168_v57 }
0x11ea   : > { %2354 = vmatpush1.bf16.msra.mxu0 %v3831_v6  ;;  %2395 = vmatpush1.bf16.msra.mxu1 %v3832_v43  ;;  %v3860_v29 = vld [vmem:[%s5100_s21 + $0x80] sm:$0xff]   ;;  %v3864_v32 = vld [vmem:[%s5100_s21 + $0x88] sm:$0xff]   ;;  %v3870_v37 = vld [vmem:[%s5100_s21 + $0xd8] sm:$0xff]  }
0x11eb   : > { %2355 = vmatprep.subr.bf16.mxu0 %v3833_v7  ;;  %2396 = vmatprep.subr.bf16.mxu1 %v3835_v8  ;;  %v3871_v38 = vld [vmem:[%s5100_s21 + $0x18] sm:$0xff]   ;;  %v3873_v42 = vld [vmem:[%s5100_s21 + $0x60] sm:$0xff]   ;;  %v3877_v48 = vld [vmem:[%s5100_s21 + $0x68] sm:$0xff]  }
0x11ec   : > { %v3872_v41 = vld [vmem:[%s5100_s21 + $0x98] sm:$0xff]   ;;  %v3874_v44 = vld [vmem:[%s5100_s21 + $0xe0] sm:$0xff]   ;;  %v3878_v39 = vld [vmem:[%s5100_s21 + $0xe8] sm:$0xff]  }
0x11ed   : > { %v3875_v46 = vld [vmem:[%s5100_s21 + $0x20] sm:$0xff]   ;;  %v3879_v49 = vld [vmem:[%s5100_s21 + $0x28] sm:$0xff]   ;;  %v3881_v40 = vld [vmem:[%s5100_s21 + $0x70] sm:$0xff]  }
0x11ee   : > { %2356 = vmatpush1.bf16.msra.mxu0 %v3837_v9  ;;  %2397 = vmatpush1.bf16.msra.mxu1 %v3838_v10  ;;  %v3876_v47 = vld [vmem:[%s5100_s21 + $0xa0] sm:$0xff]   ;;  %v3880_v50 = vld [vmem:[%s5100_s21 + $0xa8] sm:$0xff]   ;;  %v3882_v51 = vld [vmem:[%s5100_s21 + $0xf0] sm:$0xff]  }
0x11ef   : > { %2357 = vmatprep.subr.bf16.mxu0 %v3839_v12  ;;  %2398 = vmatprep.subr.bf16.mxu1 %v3841_v13  ;;  %v3883_v52 = vld [vmem:[%s5100_s21 + $0x30] sm:$0xff]   ;;  %v3885_v15 = vld [vmem:[%s5100_s21 + $0x78] sm:$0xff]  }
0x11f0   : > { %v3884_v53 = vld [vmem:[%s5100_s21 + $0xb0] sm:$0xff]   ;;  %v3886_v11 = vld [vmem:[%s5100_s21 + $0xf8] sm:$0xff]  }
0x11f1   : > { %v3887_v54 = vld [vmem:[%s5100_s21 + $0x38] sm:$0xff]  }
0x11f2   : > { %2358 = vmatpush1.bf16.msra.mxu0 %v3843_v14  ;;  %2399 = vmatpush1.bf16.msra.mxu1 %v3844_v16  ;;  %v3888_v55 = vld [vmem:[%s5100_s21 + $0xb8] sm:$0xff]   ;;  %s5713_s21 = sld [smem:[#allocation35_spill]] }
0x11f3   : > { %2359 = vmatprep.subr.bf16.mxu0 %v3845_v17  ;;  %2400 = vmatprep.subr.bf16.mxu1 %v3847_v18  ;;  %v2165_v60 = vld [vmem:[%s1054_s10] sm:$0xf] }
0x11f4   : > { %v2170_v63 = vrot.slane %v2165_v60, %v2169_v58  ;;  %v2178_v1 = vrot.slane %v2165_v60, %v2177_v59  ;;  %v2174_v3 = vrot.slane %v2165_v60, %v2173_v61  ;;  %v2182_v4 = vrot.slane %v2165_v60, %v2181_v62 }
0x11f6   : > { %2360 = vmatpush1.bf16.msra.mxu0 %v3849_v19  ;;  %2401 = vmatpush1.bf16.msra.mxu1 %v3850_v20 }
0x11f7   : > { %2361 = vmatprep.subr.bf16.mxu0 %v3851_v21  ;;  %2402 = vmatprep.subr.bf16.mxu1 %v3853_v22 }
0x11f8   : > { %p3321_p1 = scmp.ne.s32.totalorder %s5713_s21, 3 }
0x11fa   : > { %2362 = vmatpush1.bf16.msra.mxu0 %v3855_v23  ;;  %2403 = vmatpush1.bf16.msra.mxu1 %v3856_v24 }
0x11fb   : > { %3371 = vmatprep.subr.bf16.mxu0 %v3857_v26  ;;  %3393 = vmatprep.subr.bf16.mxu1 %v3858_v27 }
0x11fd   : > { %2380 = vmatmul.mubr.bf16.vlgmr.msra.gmra.mrb[0].mxu0 %v2132_v25  ;;  %2421 = vmatmul.mubr.bf16.vlgmr.msra.gmra.mrb[0].mxu1 %v2132_v25 }
0x11fe   : > { %3372 = vmatpush3.bf16.msra.mxu0 %v3859_v28  ;;  %3394 = vmatpush3.bf16.msra.mxu1 %v3860_v29 }
0x11ff   : > { %3373 = vmatprep.subr.bf16.mxu0 %v3861_v2  ;;  %3395 = vmatprep.subr.bf16.mxu1 %v3862_v30 }
0x1202   : > { %3374 = vmatpush3.bf16.msra.mxu0 %v3863_v31  ;;  %3396 = vmatpush3.bf16.msra.mxu1 %v3864_v32 }
0x1203   : > { %3375 = vmatprep.subr.bf16.mxu0 %v3865_v33  ;;  %3397 = vmatprep.subr.bf16.mxu1 %v3866_v34 }
0x1206   : > { %3376 = vmatpush3.bf16.msra.mxu0 %v3867_v35  ;;  %3398 = vmatpush3.bf16.msra.mxu1 %v3868_v0 }
0x1207   : > { %3377 = vmatprep.subr.bf16.mxu0 %v3869_v36  ;;  %3399 = vmatprep.subr.bf16.mxu1 %v3870_v37 }
0x120a   : > { %3378 = vmatpush3.bf16.msra.mxu0 %v3871_v38  ;;  %3400 = vmatpush3.bf16.msra.mxu1 %v3872_v41 }
0x120b   : > { %3379 = vmatprep.subr.bf16.mxu0 %v3873_v42  ;;  %3401 = vmatprep.subr.bf16.mxu1 %v3874_v44 }
0x120e   : > { %3380 = vmatpush3.bf16.msra.mxu0 %v3875_v46  ;;  %3402 = vmatpush3.bf16.msra.mxu1 %v3876_v47 }
0x120f   : > { %3381 = vmatprep.subr.bf16.mxu0 %v3877_v48  ;;  %3403 = vmatprep.subr.bf16.mxu1 %v3878_v39 }
0x1212   : > { %3382 = vmatpush3.bf16.msra.mxu0 %v3879_v49  ;;  %3404 = vmatpush3.bf16.msra.mxu1 %v3880_v50 }
0x1213   : > { %3383 = vmatprep.subr.bf16.mxu0 %v3881_v40  ;;  %3405 = vmatprep.subr.bf16.mxu1 %v3882_v51 }
0x1216   : > { %3384 = vmatpush3.bf16.msra.mxu0 %v3883_v52  ;;  %3406 = vmatpush3.bf16.msra.mxu1 %v3884_v53 }
0x1217   : > { %3385 = vmatprep.subr.bf16.mxu0 %v3885_v15  ;;  %3407 = vmatprep.subr.bf16.mxu1 %v3886_v11 }
0x121a   : > { %3386 = vmatpush3.bf16.msra.mxu0 %v3887_v54  ;;  %3408 = vmatpush3.bf16.msra.mxu1 %v3888_v55 }
0x12d0   : > { %v2381_v45 = vpop.f32.mrb[0].mxu0  ;;  %v2422_v5 = vpop.f32.mrb[0].mxu1 }
0x12d1   : > { %v2382_v6 = vadd.f32 %v2381_v45, %v2170_v63  ;;  %v2423_v43 = vadd.f32 %v2422_v5, %v2178_v1  ;;  %v2383_v7 = vpop.f32.mrb[1].mxu0  ;;  %v2424_v8 = vpop.f32.mrb[1].mxu1  ;;  %v2465_v1 = vld [vmem:[#allocation4] sm:$0xff]  ;;  %v2812_v5 = vld [vmem:[#allocation2] sm:$0xff] (!%p3321_p1) }
0x12d2   : > { %v2384_v9 = vadd.f32 %v2383_v7, %v2174_v3  ;;  %v2425_v10 = vadd.f32 %v2424_v8, %v2182_v4  ;;  %v2385_v12 = vpop.f32.mrb[2].mxu0  ;;  %v2426_v13 = vpop.f32.mrb[2].mxu1 }
0x12d3   : > { %v2429_v14 = vmul.f32 %v2382_v6, %v2382_v6  ;;  %v2431_v16 = vmul.f32 %v2423_v43, %v2423_v43  ;;  %v2386_v17 = vpop.f32.mrb[3].mxu0  ;;  %v2427_v18 = vpop.f32.mrb[3].mxu1 }
0x12d4   : > { %v2430_v19 = vmul.f32 %v2384_v9, %v2384_v9  ;;  %v2432_v20 = vmul.f32 %v2425_v10, %v2425_v10 }
0x12d5   : > { %v2433_v21 = vmul.f32 %v2429_v14, %v2382_v6  ;;  %v2435_v22 = vmul.f32 %v2431_v16, %v2423_v43 }
0x12d6   : > { %v2434_v23 = vmul.f32 %v2430_v19, %v2384_v9  ;;  %v2436_v24 = vmul.f32 %v2432_v20, %v2425_v10 }
0x12d7   : > { %v2437_v25 = vmul.f32 0.044715, %v2433_v21  ;;  %v2439_v26 = vmul.f32 0.044715, %v2435_v22 }
0x12d8   : > { %v2438_v27 = vmul.f32 0.044715, %v2434_v23  ;;  %v2440_v28 = vmul.f32 0.044715, %v2436_v24 }
0x12d9   : > { %v2441_v29 = vadd.f32 %v2437_v25, %v2382_v6  ;;  %v2443_v2 = vadd.f32 %v2439_v26, %v2423_v43 }
0x12da   : > { %v2442_v30 = vadd.f32 %v2438_v27, %v2384_v9  ;;  %v2444_v31 = vadd.f32 %v2440_v28, %v2425_v10 }
0x12db   : > { %v2445_v32 = vmul.f32 0.7978846, %v2441_v29  ;;  %v2447_v33 = vmul.f32 0.7978846, %v2443_v2 }
0x12dc   : > { %v2446_v34 = vmul.f32 0.7978846, %v2442_v30  ;;  %v2448_v35 = vmul.f32 0.7978846, %v2444_v31 }
0x12dd   : > { %3889 = vtanh.f32 %v2445_v32 }
0x12de   : > { %3891 = vtanh.f32 %v2447_v33 }
0x12df   : > { %3893 = vtanh.f32 %v2446_v34 }
0x12e0   : > { %3895 = vtanh.f32 %v2448_v35 }
0x12e7   : > { %v3890_v0 = vpop.eup %3889 }
0x12e8   : > { %v3892_v36 = vpop.eup %3891  ;;  %v2453_v37 = vadd.f32 1.0, %v3890_v0 }
0x12e9   : > { %v3894_v38 = vpop.eup %3893  ;;  %v2455_v41 = vadd.f32 1.0, %v3892_v36 }
0x12ea   : > { %v3896_v42 = vpop.eup %3895  ;;  %v2454_v44 = vadd.f32 1.0, %v3894_v38  ;;  %v2457_v46 = vmul.f32 0.5, %v2453_v37 }
0x12eb   : > { %v2456_v47 = vadd.f32 1.0, %v3896_v42  ;;  %v2459_v48 = vmul.f32 0.5, %v2455_v41 }
0x12ec   : > { %v2458_v39 = vmul.f32 0.5, %v2454_v44  ;;  %v2461_v50 = vmul.f32 %v2457_v46, %v2382_v6 }
0x12ed   : > { %v2460_v49 = vmul.f32 0.5, %v2456_v47  ;;  %v2463_v51 = vmul.f32 %v2459_v48, %v2423_v43  ;;  %v3322_v43 = vld [vmem:[%s1059_s5] ss:$0 sm:$0xff] (!%p3321_p1) }
0x12ee   : > { %v2462_v40 = vmul.f32 %v2458_v39, %v2384_v9  ;;  %v2466_v11 = vpack.c.bf16 %v2461_v50, %v2461_v50 }
0x12ef   : > { %v2464_v52 = vmul.f32 %v2460_v49, %v2425_v10  ;;  %v2468_v54 = vpack.c.bf16 %v2463_v51, %v2463_v51 }
0x12f0   : > { %v2467_v53 = vpack.c.bf16 %v2462_v40, %v2462_v40 }
0x12f1   : > { %v2469_v15 = vpack.c.bf16 %v2464_v52, %v2464_v52 }
0x12f2   : > { %2758 = vmatprep.mubr.bf16.mxu0 %v2467_v53 }
0x12f3   : > { %2798 = vmatprep.mubr.bf16.mxu1 %v2469_v15  ;;  %2759 = vmatmul.mubr.bf16.vlgmr.msra.gmra.mrb[4].mxu0 %v2466_v11 }
0x12f4   : > { %2799 = vmatmul.mubr.bf16.vlgmr.msra.gmra.mrb[4].mxu1 %v2468_v54 }
0x13c6   : > { %v3387_v55 = vpop.f32.mrb[4].mxu0 }
0x13c7   : > { %v3409_v56 = vpop.f32.mrb[4].mxu1  ;;  %v3388_v57 = vpop.f32.mrb[5].mxu0 }
0x13c8   : > { %v3389_v58 = vadd.f32 %v3388_v57, %v3387_v55  ;;  %v3410_v59 = vpop.f32.mrb[5].mxu1  ;;  %v3390_v60 = vpop.f32.mrb[6].mxu0 }
0x13c9   : > { %v3411_v61 = vadd.f32 %v3410_v59, %v3409_v56  ;;  %v3412_v62 = vpop.f32.mrb[6].mxu1  ;;  %v3391_v63 = vpop.f32.mrb[7].mxu0  ;;  %2811 = sbr.rel (%p3321_p1) target bundleno = 5084 (0x13dc), region = 148 }
0x13ca   : > { %v3413_v3 = vpop.f32.mrb[7].mxu1 }
0x13cb   : > { %v2801_v4 = vadd.f32 %v3411_v61, %v3389_v58 }
0x13cd   : > { %v2806_v45 = vadd.f32 %v2801_v4, %v2465_v1 }
0x13cf   : > { %2807 = vst [vmem:[#allocation4] sm:$0xff] %v2806_v45 }
0x13d6   : > { %v2813_v6 = vld [vmem:[#allocation4] sm:$0xff] }
0x13d7   : > { %v2814_v7 = vadd.f32 %v2813_v6, %v2812_v5 }
0x13d9   : > { %v2822_v8 = vadd.f32 %v3322_v43, %v2814_v7 }
0x13db   : > { %2823 = vst [vmem:[%s5103_s25] sm:$0xff] %v2822_v8 }
0x13dc PF: > { %s5715_s27 = sld [smem:[#allocation37_spill]]  ;;  %s5716_s19 = sld [smem:[#allocation55_spill]] }
0x13dd   : > { %s5717_s22 = sld [smem:[#allocation48_spill]]  ;;  %s5718_s0 = sld [smem:[#allocation76_spill]] }
0x13de   : > { %s2838_s9 = sshll.u32 %s5103_s25, 4  ;;  %s4369_s7 = smov [#allocation21]   ;;  %s2839_s9 = int_to_ptr.vmem [resolvable:$true] %s2838_s9 }
0x13df   : > { %s4163_s18 = scalar_lea.vmem %s2839_s9, 128  ;;  %s4167_s5 = sshll.u32 %s4369_s7, 4  ;;  %s4168_s5 = int_to_ptr.vmem [resolvable:$false] %s4167_s5 }
0x13e0   : > { %p4164_p6 = scmp.ne.s32.totalorder %s2839_s9, %s4163_s18  ;;  %s4169_s26 = scalar_lea.vmem %s4168_s5, 256 }
0x13e1   : > { %p4170_p0 = scmp.lt.s32.totalorder %s2839_s9, %s4168_s5  ;;  %p4171_p13 = scmp.lt.s32.totalorder %s4169_s26, %s4163_s18 }
0x13e2   : > { %s3324_s11 = sshll.u32 %s5715_s27, 7  ;;  %s2825_s3 = scalar_lea.sflag [#allocation8], %s5716_s19 }
0x13e3   : > { %s5719_s16 = smov %s5718_s0  ;;  %s5399_s14 = scalar_lea.hbm %s5718_s0, %s3324_s11 }
0x13e4   : > { %p5720_p11 = scmp.ne.s32.totalorder %s5717_s22, 0  ;;  %p4172_p2 = por %p4171_p13, %p4170_p0 }
0x13e6   : > { %p4165_p3 = pnand %p4164_p6, %p5720_p11 }
0x13e8   : > { %p4166_p12 = pneg %p4165_p3 }
0x13ea   : > { %p4173_p7 = pnand %p4172_p2, %p4166_p12 }
0x13ec   : > { %4176 = shalt.err (!%p4173_p7)
}
0x13ed   : > { %s4177_s25 = scalar_lea.hbm %s5399_s14, 128  ;;  %s4181_s24 = scalar_lea.hbm %s5719_s16, 256 }
0x13ee   : > { %p4178_p10 = scmp.ne.s32.totalorder %s5399_s14, %s4177_s25  ;;  %p4182_p9 = scmp.lt.u32.totalorder %s5399_s14, %s5719_s16 }
0x13ef   : > { %p4183_p5 = scmp.lt.u32.totalorder %s4181_s24, %s4177_s25  ;;  %p4185_p6 = scmp.lt.u32.totalorder %s4177_s25, %s5399_s14 }
0x13f0   : > { %p4179_p4 = pnand %p4178_p10, %p5720_p11 }
0x13f1   : > { %p4184_p1 = por %p4183_p5, %p4182_p9 }
0x13f2   : > { %p4180_p8 = pneg %p4179_p4 }
0x13f3   : > { %p4186_p3 = por %p4185_p6, %p4184_p1 }
0x13f5   : > { %p4187_p12 = pnand %p4186_p3, %p4180_p8 }
0x13f7   : > { %4190 = shalt.err (!%p4187_p12)
}
0x13f8   : > { %3549 = dma.vmem_to_hbm [thread:$0]  (%p5720_p11), %s2839_s9, 128, %s5399_s14, %s2825_s3  }
0x13f9 PF: > { %s5721_s12 = sld [smem:[#allocation41_spill]]  ;;  %s5722_s13 = sld [smem:[#allocation32_spill]] }
0x13fa   : > { %s5723_s2 = sld [smem:[#allocation49_spill]] }
0x13ff   : > { %p3589_p0 = scmp.ge.s32.totalorder %s5721_s12, 2  ;;  %s2850_s23 = sand.u32 1, %s5722_s13  }
0x1400   : > { %p5724_p13 = scmp.ne.s32.totalorder %s5723_s2, 0  ;;  %s2851_s1 = scalar_lea.sflag [#allocation8], %s2850_s23 }
0x1402   : > { %p3581_p2 = pnand %p3589_p0, %p5724_p13 }
0x1404   : > { %4276 = dma.done.wait (!%p3581_p2), %s2851_s1, 128  }
0x1405   : > { %4278 = vsyncadd (!%p3581_p2), %s2851_s1, 4294967168  ;;  %s46_s20 = sadd.s32 1, %s5721_s12   ;;  %s5726_s1 = sld [smem:[#allocation28_spill]] }
0x1406   : > { %p5425_p7 = scmp.ge.s32.totalorder %s46_s20, 18   ;;  %s5727_s22 = sld [smem:[#allocation29_spill]] }
0x1407   : > { %s5728_s23 = sld [smem:[#allocation54_spill]]  ;;  %s5729_s24 = sld [smem:[#allocation30_spill]] }
0x1408   : > { %s5730_s2 = sld [smem:[#allocation31_spill]]  ;;  %s5731_s25 = sld [smem:[#allocation52_spill]] }
0x1409   : > { %s5732_s3 = sld [smem:[#allocation33_spill]]  ;;  %s5733_s26 = sld [smem:[#allocation34_spill]] }
0x140a   : > { %s5734_s27 = sld [smem:[#allocation50_spill]]  ;;  %s5735_s28 = sld [smem:[#allocation38_spill]] }
0x140b   : > { %s5736_s4 = sld [smem:[#allocation39_spill]]  ;;  %s5737_s29 = sld [smem:[#allocation40_spill]] }
0x140c   : > { %s5738_s30 = sld [smem:[#allocation51_spill]]  ;;  %s5739_s0 = sld [smem:[#allocation45_spill]] }
0x140d   : > { %s5740_s21 = sld [smem:[#allocation47_spill]]  ;;  %45 = sbr.rel (!%p5425_p7) target bundleno = 40 (0x28), region = 262 }
0x1414   :  { %2856 = vsyncpa [#allocation7], 1 }
0x1415   :  { %2858 = vsyncpa [#allocation7 + $0x1], 1 }
0x1416   :  { %2859 = vsyncpa [#allocation10], 1 }
0x1417   :  { %2861 = vsyncpa [#allocation10 + $0x1], 1 }
0x1418   :  { %2862 = vsyncpa [#allocation13], 1 }
0x1419   :  { %2863 = vsyncpa [#allocation16], 1 }
0x141a   :  { %2865 = vsyncpa [#allocation16 + $0x1], 1 }
0x141b   :  { %2866 = vsyncpa [#allocation19], 1 }
0x141c   :  { %2868 = vsyncpa [#allocation19 + $0x1], 1 }
0x141d   :  { %2869 = vsyncpa [#allocation8], 1 }
0x141e   :  { %2871 = vsyncpa [#allocation8 + $0x1], 1 }

</bundles_post_ra>
